<compile_context>
chip_gen: v7x
topology: tpu7x:2x2x1
jax: 0.10.0
libtpu: 0.0.40
codegen_flags: <defaults>
</compile_context>

<pallas_src>
import functools
import math

import jax
import jax.numpy as jnp
from jax.experimental import pallas as pl
from jax.experimental.pallas import tpu as pltpu

NEG_INF = -1e20
LN_EPS = 1e-5

PARAM_ORDER = [
    "n1g", "n1b",
    "swq", "sbq", "swk", "sbk", "swv", "sbv", "swo", "sbo",
    "n2g", "n2b",
    "ewq", "ebq", "ewk", "ebk", "ewv", "ebv", "ewo", "ebo",
    "fw1", "fb1", "fw2", "fb2",
]
_WEIGHT_KEYS = {"swq", "swk", "swv", "swo", "ewq", "ewk", "ewv", "ewo", "fw1", "fw2"}


# ----------------------------- in-kernel helpers -----------------------------

def _layer_norm(x, gamma, beta):
    # x: (N, D) f32, gamma/beta: (1, D) f32
    mean = jnp.mean(x, axis=-1, keepdims=True)
    var = jnp.mean((x - mean) ** 2, axis=-1, keepdims=True)
    return (x - mean) * jax.lax.rsqrt(var + LN_EPS) * gamma + beta


def _mha(q_src, kv_src, bb, tq, tk, add_mask,
         wq, bq, wk, bk, wv, bv, wo, bo, n_heads, same_kv=False):
    """Multi-head attention on flattened (bb*tq, D) / (bb*tk, D) activations.

    Weight matrices are bf16 (the 1/sqrt(dph) scale is already folded into
    wq/bq); all matmuls accumulate in f32.  add_mask is additive (-1e20 for
    masked positions) and broadcastable to (bb, tq, tk).  Softmax stays f32.
    """
    D = q_src.shape[-1]
    dph = D // n_heads

    q16 = q_src.astype(jnp.bfloat16)
    kv16 = q16 if same_kv else kv_src.astype(jnp.bfloat16)

    # Flattened projections: (bb*t, D) LHS tiles keep the MXU busy.
    q = jnp.dot(q16, wq, preferred_element_type=jnp.float32) + bq
    k = jnp.dot(kv16, wk, preferred_element_type=jnp.float32) + bk
    v = jnp.dot(kv16, wv, preferred_element_type=jnp.float32) + bv

    q3 = q.reshape(bb, tq, D)
    k3 = k.reshape(bb, tk, D)
    v3 = v.reshape(bb, tk, D)

    # Additive mask broadcast hoisted out of the head loop (no per-head
    # broadcast_in_dim re-emission).
    mask_b = jnp.broadcast_to(add_mask, (bb, tq, tk)).astype(jnp.float32)

    # TODO(synk): for long sequences (T or S >~ 512) this block should become a
    # kv-tiled online-softmax (flash-style) with causal tile skipping instead
    # of materializing the full (bb, tq, tk) score tensor per head.
    ctx_parts = []
    for h in range(n_heads):          # static unroll; n_heads is small & fixed
        lo = h * dph
        qh = q3[:, :, lo:lo + dph].astype(jnp.bfloat16)   # (bb, tq, dph)
        kh = k3[:, :, lo:lo + dph].astype(jnp.bfloat16)   # (bb, tk, dph)
        vh = v3[:, :, lo:lo + dph].astype(jnp.bfloat16)   # (bb, tk, dph)

        s = jnp.einsum("bqd,bkd->bqk", qh, kh,
                       preferred_element_type=jnp.float32)         # (bb, tq, tk)
        s = s + mask_b
        s = s - jnp.max(s, axis=-1, keepdims=True)
        p = jnp.exp(s)                 # f32 exp: portable to v5e (no bf16 EUP)
        p = p * pl.reciprocal(jnp.sum(p, axis=-1, keepdims=True), approx=True)

        ctx_parts.append(
            jnp.einsum("bqk,bkd->bqd", p.astype(jnp.bfloat16), vh,
                       preferred_element_type=jnp.float32))        # (bb, tq, dph)

    # Single full-width output projection (one K = D matmul on the MXU) instead
    # of n_heads K=dph matmuls accumulated through an f32 VMEM buffer.
    ctx = jnp.concatenate(ctx_parts, axis=-1)            # (bb, tq, D) f32
    ctx2 = ctx.reshape(bb * tq, D).astype(jnp.bfloat16)
    return jnp.dot(ctx2, wo, preferred_element_type=jnp.float32) + bo


# --------------------------------- kernel ------------------------------------

def decoder_layer_kernel(
    x_ref, enc_ref, encadd_ref, causal_ref,
    n1g, n1b,
    swq, sbq, swk, sbk, swv, sbv, swo, sbo,
    n2g, n2b,
    ewq, ebq, ewk, ebk, ewv, ebv, ewo, ebo,
    fw1, fb1, fw2, fb2,
    out_ref, *, n_heads, bb, t_dec, t_enc):
    x = x_ref[...]        # (bb*t_dec, D) f32
    enc = enc_ref[...]    # (bb*t_enc, D) f32

    # ---- self attention (causal additive mask precomputed in the wrapper) ----
    x_norm = _layer_norm(x, n1g[...], n1b[...])
    causal_add = causal_ref[...][None, :, :]              # (1, T, T)
    sa = _mha(x_norm, x_norm, bb, t_dec, t_dec, causal_add,
              swq[...], sbq[...], swk[...], sbk[...], swv[...], sbv[...],
              swo[...], sbo[...], n_heads, same_kv=True)
    # TODO(synk): dropout is identity here (p=0 / inference path); training-mode
    # dropout would need pltpu.prng_* based masking.
    query = sa + x

    # ---- encoder attention (additive key mask precomputed in the wrapper) ----
    q_norm = _layer_norm(query, n2g[...], n2b[...])
    ea = _mha(q_norm, enc, bb, t_dec, t_enc, encadd_ref[...],
              ewq[...], ebq[...], ewk[...], ebk[...], ewv[...], ebv[...],
              ewo[...], ebo[...], n_heads, same_kv=False)

    # ---- FFN (bf16 operands, f32 accumulate, f32 elementwise) ----
    # TODO(synk): at production D (e.g. 1024, FFN=4D) on v7x, fw1/fw2 should be
    # tiled over an extra 'arbitrary' grid axis instead of held fully resident.
    ffn_in = (ea + query).astype(jnp.bfloat16)
    h = jnp.dot(ffn_in, fw1[...], preferred_element_type=jnp.float32) + fb1[...]
    h = jnp.maximum(h, 0.0)
    out = jnp.dot(h.astype(jnp.bfloat16), fw2[...],
                  preferred_element_type=jnp.float32) + fb2[...]
    out_ref[...] = out.astype(out_ref.dtype)


# --------------------------------- wrapper -----------------------------------

def _pick_batch_block(batch, rows_per_elem, target_rows=512, min_blocks=2):
    """Largest divisor of `batch` whose flattened row count stays <= target_rows,
    while keeping at least `min_blocks` grid steps (so both v7x TensorCores get
    work on the single 'parallel' grid axis)."""
    best = 1
    for d in range(1, batch + 1):
        if batch % d:
            continue
        if batch >= min_blocks and (batch // d) < min_blocks:
            continue
        if d * rows_per_elem <= max(target_rows, rows_per_elem):
            best = max(best, d)
    return best


def _param_pipeline_mode():
    """pl.Buffered(1) if this Pallas supports single-buffered BlockSpecs."""
    if not hasattr(pl, "Buffered"):
        return None
    try:
        pl.BlockSpec((8, 128), lambda b: (0, 0), pipeline_mode=pl.Buffered(1))
    except (TypeError, ValueError):
        return None
    return pl.Buffered(1)


def _vmem_limit_bytes(default_bytes=48 * 1024 * 1024):
    """~3/4 of physical VMEM per core (headroom for Mosaic scratch/stack):
    ~96 MiB on 128 MiB v5e/v6e, ~48 MiB on 64 MiB-per-TC v7x."""
    try:
        info = pltpu.get_tpu_info()
        for name in ("vmem_capacity_bytes", "vmem_size_bytes", "vmem_bytes"):
            cap = getattr(info, name, None)
            if cap:
                return max(32 * 1024 * 1024, (int(cap) * 3) // 4)
    except Exception:
        pass
    return default_bytes


def prepare_params(params, n_heads):
    """Fold the 1/sqrt(dph) query scale into wq/bq and cast weight matrices to
    bf16 (biases / LayerNorm params stay f32)."""
    dim = params["swq"].shape[0]
    scale = 1.0 / math.sqrt(dim // n_heads)
    prepped = {}
    for k in PARAM_ORDER:
        p = params[k]
        if k in ("swq", "sbq", "ewq", "ebq"):
            p = p * scale
        if k in _WEIGHT_KEYS:
            p = p.astype(jnp.bfloat16)
        prepped[k] = p
    return prepped


def transformer_decoder_layer(x, encoder_output, encoder_mask, params, n_heads,
                              *, batch_block=None, single_buffer_params=True):
    B, T, D = x.shape
    S = encoder_output.shape[1]
    bb = batch_block if batch_block is not None else _pick_batch_block(B, T)
    assert B % bb == 0, (B, bb)
    n_blocks = B // bb

    # Flatten to 2-D row-major slabs: all big matmuls see (bb*T, D) operands.
    x2 = x.reshape(B * T, D)
    enc2 = encoder_output.reshape(B * S, D)
    # Additive encoder-key mask and causal mask built once in the wrapper
    # (layout plumbing, not per-step kernel compute).
    enc_add = jnp.where(encoder_mask.reshape(B, 1, S) == 0, NEG_INF, 0.0
                        ).astype(jnp.float32)
    tri = jnp.tril(jnp.ones((T, T), jnp.float32))
    causal_add = jnp.where(tri > 0.0, 0.0, NEG_INF).astype(jnp.float32)

    prepped = prepare_params(params, n_heads)
    flat_params = [prepped[k] for k in PARAM_ORDER]

    kernel = functools.partial(decoder_layer_kernel, n_heads=n_heads,
                               bb=bb, t_dec=T, t_enc=S)
    vmem_limit = _vmem_limit_bytes()

    def build_and_run(param_mode):
        if param_mode is None:
            def pspec(p):
                return pl.BlockSpec(p.shape, lambda b: (0, 0))
        else:
            def pspec(p):
                return pl.BlockSpec(p.shape, lambda b: (0, 0),
                                    pipeline_mode=param_mode)
        in_specs = [
            pl.BlockSpec((bb * T, D), lambda b: (b, 0)),     # x (batch-blocked rows)
            pl.BlockSpec((bb * S, D), lambda b: (b, 0)),     # encoder_output
            pl.BlockSpec((bb, 1, S), lambda b: (b, 0, 0)),   # additive enc mask
            pl.BlockSpec((T, T), lambda b: (0, 0)),          # causal mask (constant)
        ] + [pspec(p) for p in flat_params]
        out2 = pl.pallas_call(
            kernel,
            out_shape=jax.ShapeDtypeStruct((B * T, D), jnp.float32),
            grid=(n_blocks,),
            in_specs=in_specs,
            out_specs=pl.BlockSpec((bb * T, D), lambda b: (b, 0)),
            compiler_params=pltpu.CompilerParams(
                dimension_semantics=("parallel",),     # megacore sharding on v7x
                vmem_limit_bytes=vmem_limit,
            ),
        )(x2, enc2, enc_add, causal_add, *flat_params)
        return out2.reshape(B, T, D)

    param_mode = _param_pipeline_mode() if single_buffer_params else None
    if param_mode is None:
        return build_and_run(None)
    try:
        return build_and_run(param_mode)
    except Exception as e:
        msg = str(e).lower()
        if "buffer" in msg or "pipeline" in msg:
            # This Pallas build rejects single-buffered params: retry with the
            # default double buffering.  Any other error is re-raised.
            return build_and_run(None)
        raise


# ------------------------------ param init -----------------------------------

def init_params(key, dim, ffn_dim):
    keys = jax.random.split(key, 32)
    ki = iter(range(32))

    def lin(din, dout):
        w = jax.random.normal(keys[next(ki)], (din, dout), jnp.float32) / math.sqrt(din)
        b = jax.random.normal(keys[next(ki)], (1, dout), jnp.float32) * 0.01
        return w, b

    def ln_params():
        g = 1.0 + 0.1 * jax.random.normal(keys[next(ki)], (1, dim), jnp.float32)
        b = 0.01 * jax.random.normal(keys[next(ki)], (1, dim), jnp.float32)
        return g, b

    p = {}
    p["n1g"], p["n1b"] = ln_params()
    p["swq"], p["sbq"] = lin(dim, dim)
    p["swk"], p["sbk"] = lin(dim, dim)
    p["swv"], p["sbv"] = lin(dim, dim)
    p["swo"], p["sbo"] = lin(dim, dim)
    p["n2g"], p["n2b"] = ln_params()
    p["ewq"], p["ebq"] = lin(dim, dim)
    p["ewk"], p["ebk"] = lin(dim, dim)
    p["ewv"], p["ebv"] = lin(dim, dim)
    p["ewo"], p["ebo"] = lin(dim, dim)
    p["fw1"], p["fb1"] = lin(dim, ffn_dim)
    p["fw2"], p["fb2"] = lin(ffn_dim, dim)
    return p


# ----------------------------- pure-JAX reference ----------------------------

def ref_decoder_layer(x, enc, enc_mask, p, n_heads):
    def ln(v, g, b):
        m = v.mean(-1, keepdims=True)
        var = ((v - m) ** 2).mean(-1, keepdims=True)
        return (v - m) / jnp.sqrt(var + LN_EPS) * g + b

    def mha(qi, ki, vi, wq, bq, wk, bk, wv, bv, wo, bo, add_mask):
        B, Tq, D = qi.shape
        Tk = ki.shape[1]
        dph = D // n_heads
        q = (qi @ wq + bq) * (1.0 / math.sqrt(dph))
        k = ki @ wk + bk
        v = vi @ wv + bv
        qh = q.reshape(B, Tq, n_heads, dph).transpose(0, 2, 1, 3)
        kh = k.reshape(B, Tk, n_heads, dph).transpose(0, 2, 1, 3)
        vh = v.reshape(B, Tk, n_heads, dph).transpose(0, 2, 1, 3)
        s = jnp.einsum("bhtd,bhsd->bhts", qh, kh) + add_mask
        w = jax.nn.softmax(s, axis=-1)
        a = jnp.einsum("bhts,bhsd->bhtd", w, vh)
        a = a.transpose(0, 2, 1, 3).reshape(B, Tq, D)
        return a @ wo + bo

    B, T, D = x.shape
    x_norm = ln(x, p["n1g"], p["n1b"])
    causal = jnp.where(
        jnp.arange(T)[None, :] <= jnp.arange(T)[:, None], 0.0, NEG_INF
    )[None, None, :, :]
    sa = mha(x_norm, x_norm, x_norm,
             p["swq"], p["sbq"], p["swk"], p["sbk"], p["swv"], p["sbv"],
             p["swo"], p["sbo"], causal)
    query = sa + x
    q_norm = ln(query, p["n2g"], p["n2b"])
    enc_add = jnp.where(enc_mask == 0, NEG_INF, 0.0)[:, None, None, :]
    ea = mha(q_norm, enc, enc,
             p["ewq"], p["ebq"], p["ewk"], p["ebk"], p["ewv"], p["ebv"],
             p["ewo"], p["ebo"], enc_add)
    ffn_in = ea + query
    h = jnp.maximum(ffn_in @ p["fw1"] + p["fb1"], 0.0)
    return h @ p["fw2"] + p["fb2"]


# ----------------------------------- main -------------------------------------

if __name__ == "__main__":
    B, T, S, D, H, FFN = 2, 8, 16, 32, 4, 64

    key = jax.random.PRNGKey(0)
    k_x, k_enc, k_p = jax.random.split(key, 3)
    x = jax.random.normal(k_x, (B, T, D), jnp.float32)
    enc_out = jax.random.normal(k_enc, (B, S, D), jnp.float32)
    enc_mask = jnp.ones((B, S), jnp.int32).at[1, 12:].set(0)  # pad tail of batch 1

    params = init_params(k_p, D, FFN)

    out = transformer_decoder_layer(x, enc_out, enc_mask, params, n_heads=H)
    out = jax.block_until_ready(out)

    ref = jax.block_until_ready(ref_decoder_layer(x, enc_out, enc_mask, params, H))
    max_err = float(jnp.max(jnp.abs(out - ref)))
    assert out.shape == (B, T, D), out.shape
    # bf16 matmul operands + approx softmax reciprocal vs. the f32 reference.
    assert max_err < 5e-2, f"max abs error {max_err}"
    print("KERNEL_OK")
</pallas_src>

<mosaic_0001>
module attributes {stable_mosaic.version = 11 : i64} {
  func.func @decoder_layer_kernel(%arg0: i32, %arg1: memref<8x32xf32, #tpu.memory_space<vmem>>, %arg2: memref<16x32xf32, #tpu.memory_space<vmem>>, %arg3: memref<1x1x16xf32, #tpu.memory_space<vmem>>, %arg4: memref<8x8xf32, #tpu.memory_space<vmem>>, %arg5: memref<1x32xf32, #tpu.memory_space<vmem>>, %arg6: memref<1x32xf32, #tpu.memory_space<vmem>>, %arg7: memref<32x32xbf16, #tpu.memory_space<vmem>>, %arg8: memref<1x32xf32, #tpu.memory_space<vmem>>, %arg9: memref<32x32xbf16, #tpu.memory_space<vmem>>, %arg10: memref<1x32xf32, #tpu.memory_space<vmem>>, %arg11: memref<32x32xbf16, #tpu.memory_space<vmem>>, %arg12: memref<1x32xf32, #tpu.memory_space<vmem>>, %arg13: memref<32x32xbf16, #tpu.memory_space<vmem>>, %arg14: memref<1x32xf32, #tpu.memory_space<vmem>>, %arg15: memref<1x32xf32, #tpu.memory_space<vmem>>, %arg16: memref<1x32xf32, #tpu.memory_space<vmem>>, %arg17: memref<32x32xbf16, #tpu.memory_space<vmem>>, %arg18: memref<1x32xf32, #tpu.memory_space<vmem>>, %arg19: memref<32x32xbf16, #tpu.memory_space<vmem>>, %arg20: memref<1x32xf32, #tpu.memory_space<vmem>>, %arg21: memref<32x32xbf16, #tpu.memory_space<vmem>>, %arg22: memref<1x32xf32, #tpu.memory_space<vmem>>, %arg23: memref<32x32xbf16, #tpu.memory_space<vmem>>, %arg24: memref<1x32xf32, #tpu.memory_space<vmem>>, %arg25: memref<32x64xbf16, #tpu.memory_space<vmem>>, %arg26: memref<1x64xf32, #tpu.memory_space<vmem>>, %arg27: memref<64x32xbf16, #tpu.memory_space<vmem>>, %arg28: memref<1x32xf32, #tpu.memory_space<vmem>>, %arg29: memref<8x32xf32, #tpu.memory_space<vmem>>) attributes {dimension_semantics = [#tpu.dimension_semantics<parallel>], iteration_bounds = array<i64: 2>, scalar_prefetch = 0 : i64, scratch_operands = 0 : i64, tpu.core_type = #tpu.core_type<tc>, window_params = [{transform_indices = @transform_0, window_bounds = array<i64: 8, 32>}, {transform_indices = @transform_1, window_bounds = array<i64: 16, 32>}, {transform_indices = @transform_2, window_bounds = array<i64: 1, 1, 16>}, {pipeline_mode = #tpu.pipeline_mode<synchronous>, transform_indices = @transform_3, window_bounds = array<i64: 8, 8>}, {pipeline_mode = #tpu.pipeline_mode<synchronous>, transform_indices = @transform_4, window_bounds = array<i64: 1, 32>}, {pipeline_mode = #tpu.pipeline_mode<synchronous>, transform_indices = @transform_5, window_bounds = array<i64: 1, 32>}, {pipeline_mode = #tpu.pipeline_mode<synchronous>, transform_indices = @transform_6, window_bounds = array<i64: 32, 32>}, {pipeline_mode = #tpu.pipeline_mode<synchronous>, transform_indices = @transform_7, window_bounds = array<i64: 1, 32>}, {pipeline_mode = #tpu.pipeline_mode<synchronous>, transform_indices = @transform_8, window_bounds = array<i64: 32, 32>}, {pipeline_mode = #tpu.pipeline_mode<synchronous>, transform_indices = @transform_9, window_bounds = array<i64: 1, 32>}, {pipeline_mode = #tpu.pipeline_mode<synchronous>, transform_indices = @transform_10, window_bounds = array<i64: 32, 32>}, {pipeline_mode = #tpu.pipeline_mode<synchronous>, transform_indices = @transform_11, window_bounds = array<i64: 1, 32>}, {pipeline_mode = #tpu.pipeline_mode<synchronous>, transform_indices = @transform_12, window_bounds = array<i64: 32, 32>}, {pipeline_mode = #tpu.pipeline_mode<synchronous>, transform_indices = @transform_13, window_bounds = array<i64: 1, 32>}, {pipeline_mode = #tpu.pipeline_mode<synchronous>, transform_indices = @transform_14, window_bounds = array<i64: 1, 32>}, {pipeline_mode = #tpu.pipeline_mode<synchronous>, transform_indices = @transform_15, window_bounds = array<i64: 1, 32>}, {pipeline_mode = #tpu.pipeline_mode<synchronous>, transform_indices = @transform_16, window_bounds = array<i64: 32, 32>}, {pipeline_mode = #tpu.pipeline_mode<synchronous>, transform_indices = @transform_17, window_bounds = array<i64: 1, 32>}, {pipeline_mode = #tpu.pipeline_mode<synchronous>, transform_indices = @transform_18, window_bounds = array<i64: 32, 32>}, {pipeline_mode = #tpu.pipeline_mode<synchronous>, transform_indices = @transform_19, window_bounds = array<i64: 1, 32>}, {pipeline_mode = #tpu.pipeline_mode<synchronous>, transform_indices = @transform_20, window_bounds = array<i64: 32, 32>}, {pipeline_mode = #tpu.pipeline_mode<synchronous>, transform_indices = @transform_21, window_bounds = array<i64: 1, 32>}, {pipeline_mode = #tpu.pipeline_mode<synchronous>, transform_indices = @transform_22, window_bounds = array<i64: 32, 32>}, {pipeline_mode = #tpu.pipeline_mode<synchronous>, transform_indices = @transform_23, window_bounds = array<i64: 1, 32>}, {pipeline_mode = #tpu.pipeline_mode<synchronous>, transform_indices = @transform_24, window_bounds = array<i64: 32, 64>}, {pipeline_mode = #tpu.pipeline_mode<synchronous>, transform_indices = @transform_25, window_bounds = array<i64: 1, 64>}, {pipeline_mode = #tpu.pipeline_mode<synchronous>, transform_indices = @transform_26, window_bounds = array<i64: 64, 32>}, {pipeline_mode = #tpu.pipeline_mode<synchronous>, transform_indices = @transform_27, window_bounds = array<i64: 1, 32>}, {transform_indices = @transform_28, window_bounds = array<i64: 8, 32>}]} {
    %c0 = arith.constant 0 : index
    %c0_0 = arith.constant 0 : index
    %0 = vector.load %arg1[%c0, %c0_0] : memref<8x32xf32, #tpu.memory_space<vmem>>, vector<8x32xf32>
    %c0_1 = arith.constant 0 : index
    %c0_2 = arith.constant 0 : index
    %1 = vector.load %arg2[%c0_1, %c0_2] : memref<16x32xf32, #tpu.memory_space<vmem>>, vector<16x32xf32>
    %c0_3 = arith.constant 0 : index
    %c0_4 = arith.constant 0 : index
    %2 = vector.load %arg5[%c0_3, %c0_4] : memref<1x32xf32, #tpu.memory_space<vmem>>, vector<1x32xf32>
    %c0_5 = arith.constant 0 : index
    %c0_6 = arith.constant 0 : index
    %3 = vector.load %arg6[%c0_5, %c0_6] : memref<1x32xf32, #tpu.memory_space<vmem>>, vector<1x32xf32>
    %cst = arith.constant dense<0.000000e+00> : vector<8xf32>
    %4 = vector.multi_reduction <add>, %0, %cst [1] : vector<8x32xf32> to vector<8xf32>
    %5 = vector.shape_cast %4 : vector<8xf32> to vector<8x1xf32>
    %cst_7 = arith.constant 3.200000e+01 : f32
    %6 = vector.broadcast %cst_7 : f32 to vector<8x1xf32>
    %7 = arith.divf %5, %6 : vector<8x1xf32>
    %8 = vector.broadcast %7 : vector<8x1xf32> to vector<8x32xf32>
    %9 = arith.subf %0, %8 : vector<8x32xf32>
    %10 = arith.mulf %9, %9 : vector<8x32xf32>
    %cst_8 = arith.constant dense<0.000000e+00> : vector<8xf32>
    %11 = vector.multi_reduction <add>, %10, %cst_8 [1] : vector<8x32xf32> to vector<8xf32>
    %12 = vector.shape_cast %11 : vector<8xf32> to vector<8x1xf32>
    %cst_9 = arith.constant 3.200000e+01 : f32
    %13 = vector.broadcast %cst_9 : f32 to vector<8x1xf32>
    %14 = arith.divf %12, %13 : vector<8x1xf32>
    %15 = vector.broadcast %7 : vector<8x1xf32> to vector<8x32xf32>
    %16 = arith.subf %0, %15 : vector<8x32xf32>
    %cst_10 = arith.constant 9.99999974E-6 : f32
    %17 = vector.broadcast %cst_10 : f32 to vector<8x1xf32>
    %18 = arith.addf %14, %17 : vector<8x1xf32>
    %19 = math.rsqrt %18 : vector<8x1xf32>
    %20 = vector.broadcast %19 : vector<8x1xf32> to vector<8x32xf32>
    %21 = arith.mulf %16, %20 : vector<8x32xf32>
    %22 = vector.broadcast %2 : vector<1x32xf32> to vector<8x32xf32>
    %23 = arith.mulf %21, %22 : vector<8x32xf32>
    %24 = vector.broadcast %3 : vector<1x32xf32> to vector<8x32xf32>
    %25 = arith.addf %23, %24 : vector<8x32xf32>
    %c0_11 = arith.constant 0 : index
    %c0_12 = arith.constant 0 : index
    %26 = vector.load %arg4[%c0_11, %c0_12] : memref<8x8xf32, #tpu.memory_space<vmem>>, vector<8x8xf32>
    %27 = vector.shape_cast %26 : vector<8x8xf32> to vector<1x8x8xf32>
    %c0_13 = arith.constant 0 : index
    %c0_14 = arith.constant 0 : index
    %28 = vector.load %arg7[%c0_13, %c0_14] : memref<32x32xbf16, #tpu.memory_space<vmem>>, vector<32x32xbf16>
    %c0_15 = arith.constant 0 : index
    %c0_16 = arith.constant 0 : index
    %29 = vector.load %arg8[%c0_15, %c0_16] : memref<1x32xf32, #tpu.memory_space<vmem>>, vector<1x32xf32>
    %c0_17 = arith.constant 0 : index
    %c0_18 = arith.constant 0 : index
    %30 = vector.load %arg9[%c0_17, %c0_18] : memref<32x32xbf16, #tpu.memory_space<vmem>>, vector<32x32xbf16>
    %c0_19 = arith.constant 0 : index
    %c0_20 = arith.constant 0 : index
    %31 = vector.load %arg10[%c0_19, %c0_20] : memref<1x32xf32, #tpu.memory_space<vmem>>, vector<1x32xf32>
    %c0_21 = arith.constant 0 : index
    %c0_22 = arith.constant 0 : index
    %32 = vector.load %arg11[%c0_21, %c0_22] : memref<32x32xbf16, #tpu.memory_space<vmem>>, vector<32x32xbf16>
    %c0_23 = arith.constant 0 : index
    %c0_24 = arith.constant 0 : index
    %33 = vector.load %arg12[%c0_23, %c0_24] : memref<1x32xf32, #tpu.memory_space<vmem>>, vector<1x32xf32>
    %c0_25 = arith.constant 0 : index
    %c0_26 = arith.constant 0 : index
    %34 = vector.load %arg13[%c0_25, %c0_26] : memref<32x32xbf16, #tpu.memory_space<vmem>>, vector<32x32xbf16>
    %c0_27 = arith.constant 0 : index
    %c0_28 = arith.constant 0 : index
    %35 = vector.load %arg14[%c0_27, %c0_28] : memref<1x32xf32, #tpu.memory_space<vmem>>, vector<1x32xf32>
    %36 = arith.truncf %25 : vector<8x32xf32> to vector<8x32xbf16>
    %cst_29 = arith.constant dense<0.000000e+00> : vector<8x32xf32>
    %37 = tpu.matmul %36, %28, %cst_29 {dimension_numbers = #tpu.dot_dimension_numbers<[1], [0], [0], [1], [0, 0, 1, 1], [], []>} : vector<8x32xbf16>, vector<32x32xbf16>, vector<8x32xf32> -> vector<8x32xf32>
    %38 = vector.broadcast %29 : vector<1x32xf32> to vector<8x32xf32>
    %39 = arith.addf %37, %38 : vector<8x32xf32>
    %cst_30 = arith.constant dense<0.000000e+00> : vector<8x32xf32>
    %40 = tpu.matmul %36, %30, %cst_30 {dimension_numbers = #tpu.dot_dimension_numbers<[1], [0], [0], [1], [0, 0, 1, 1], [], []>} : vector<8x32xbf16>, vector<32x32xbf16>, vector<8x32xf32> -> vector<8x32xf32>
    %41 = vector.broadcast %31 : vector<1x32xf32> to vector<8x32xf32>
    %42 = arith.addf %40, %41 : vector<8x32xf32>
    %cst_31 = arith.constant dense<0.000000e+00> : vector<8x32xf32>
    %43 = tpu.matmul %36, %32, %cst_31 {dimension_numbers = #tpu.dot_dimension_numbers<[1], [0], [0], [1], [0, 0, 1, 1], [], []>} : vector<8x32xbf16>, vector<32x32xbf16>, vector<8x32xf32> -> vector<8x32xf32>
    %44 = vector.broadcast %33 : vector<1x32xf32> to vector<8x32xf32>
    %45 = arith.addf %43, %44 : vector<8x32xf32>
    %46 = vector.shape_cast %39 : vector<8x32xf32> to vector<1x8x32xf32>
    %47 = vector.shape_cast %42 : vector<8x32xf32> to vector<1x8x32xf32>
    %48 = vector.shape_cast %45 : vector<8x32xf32> to vector<1x8x32xf32>
    %49 = vector.extract_strided_slice %46 {offsets = [0, 0, 0], sizes = [1, 8, 8], strides = [1, 1, 1]} : vector<1x8x32xf32> to vector<1x8x8xf32>
    %50 = arith.truncf %49 : vector<1x8x8xf32> to vector<1x8x8xbf16>
    %51 = vector.extract_strided_slice %47 {offsets = [0, 0, 0], sizes = [1, 8, 8], strides = [1, 1, 1]} : vector<1x8x32xf32> to vector<1x8x8xf32>
    %52 = arith.truncf %51 : vector<1x8x8xf32> to vector<1x8x8xbf16>
    %53 = vector.extract_strided_slice %48 {offsets = [0, 0, 0], sizes = [1, 8, 8], strides = [1, 1, 1]} : vector<1x8x32xf32> to vector<1x8x8xf32>
    %54 = arith.truncf %53 : vector<1x8x8xf32> to vector<1x8x8xbf16>
    "tpu.trace_start"() <{level = 10 : i32, message = "bqd,bkd->bqk"}> : () -> ()
    %cst_32 = arith.constant dense<0.000000e+00> : vector<1x8x8xf32>
    %55 = tpu.matmul %50, %52, %cst_32 {dimension_numbers = #tpu.dot_dimension_numbers<[2], [2], [1], [1], [0, 0, 0, 1, 1, 1], [0], [0]>} : vector<1x8x8xbf16>, vector<1x8x8xbf16>, vector<1x8x8xf32> -> vector<1x8x8xf32>
    "tpu.trace_stop"() : () -> ()
    %56 = arith.addf %55, %27 : vector<1x8x8xf32>
    %cst_33 = arith.constant dense<0xFF800000> : vector<1x8xf32>
    %57 = vector.multi_reduction <maximumf>, %56, %cst_33 [2] : vector<1x8x8xf32> to vector<1x8xf32>
    %58 = vector.shape_cast %57 : vector<1x8xf32> to vector<1x8x1xf32>
    %59 = vector.broadcast %58 : vector<1x8x1xf32> to vector<1x8x8xf32>
    %60 = arith.subf %56, %59 : vector<1x8x8xf32>
    %61 = math.exp %60 : vector<1x8x8xf32>
    %cst_34 = arith.constant dense<0.000000e+00> : vector<1x8xf32>
    %62 = vector.multi_reduction <add>, %61, %cst_34 [2] : vector<1x8x8xf32> to vector<1x8xf32>
    %63 = vector.shape_cast %62 : vector<1x8xf32> to vector<1x8x1xf32>
    %64 = tpu.reciprocal %63 {approx = true} : vector<1x8x1xf32> -> vector<1x8x1xf32>
    %65 = vector.broadcast %64 : vector<1x8x1xf32> to vector<1x8x8xf32>
    %66 = arith.mulf %61, %65 : vector<1x8x8xf32>
    %67 = arith.truncf %66 : vector<1x8x8xf32> to vector<1x8x8xbf16>
    "tpu.trace_start"() <{level = 10 : i32, message = "bqk,bkd->bqd"}> : () -> ()
    %cst_35 = arith.constant dense<0.000000e+00> : vector<1x8x8xf32>
    %68 = tpu.matmul %67, %54, %cst_35 {dimension_numbers = #tpu.dot_dimension_numbers<[2], [1], [1], [2], [0, 0, 0, 1, 1, 2], [0], [0]>} : vector<1x8x8xbf16>, vector<1x8x8xbf16>, vector<1x8x8xf32> -> vector<1x8x8xf32>
    "tpu.trace_stop"() : () -> ()
    %69 = vector.extract_strided_slice %46 {offsets = [0, 0, 8], sizes = [1, 8, 8], strides = [1, 1, 1]} : vector<1x8x32xf32> to vector<1x8x8xf32>
    %70 = arith.truncf %69 : vector<1x8x8xf32> to vector<1x8x8xbf16>
    %71 = vector.extract_strided_slice %47 {offsets = [0, 0, 8], sizes = [1, 8, 8], strides = [1, 1, 1]} : vector<1x8x32xf32> to vector<1x8x8xf32>
    %72 = arith.truncf %71 : vector<1x8x8xf32> to vector<1x8x8xbf16>
    %73 = vector.extract_strided_slice %48 {offsets = [0, 0, 8], sizes = [1, 8, 8], strides = [1, 1, 1]} : vector<1x8x32xf32> to vector<1x8x8xf32>
    %74 = arith.truncf %73 : vector<1x8x8xf32> to vector<1x8x8xbf16>
    "tpu.trace_start"() <{level = 10 : i32, message = "bqd,bkd->bqk"}> : () -> ()
    %cst_36 = arith.constant dense<0.000000e+00> : vector<1x8x8xf32>
    %75 = tpu.matmul %70, %72, %cst_36 {dimension_numbers = #tpu.dot_dimension_numbers<[2], [2], [1], [1], [0, 0, 0, 1, 1, 1], [0], [0]>} : vector<1x8x8xbf16>, vector<1x8x8xbf16>, vector<1x8x8xf32> -> vector<1x8x8xf32>
    "tpu.trace_stop"() : () -> ()
    %76 = arith.addf %75, %27 : vector<1x8x8xf32>
    %cst_37 = arith.constant dense<0xFF800000> : vector<1x8xf32>
    %77 = vector.multi_reduction <maximumf>, %76, %cst_37 [2] : vector<1x8x8xf32> to vector<1x8xf32>
    %78 = vector.shape_cast %77 : vector<1x8xf32> to vector<1x8x1xf32>
    %79 = vector.broadcast %78 : vector<1x8x1xf32> to vector<1x8x8xf32>
    %80 = arith.subf %76, %79 : vector<1x8x8xf32>
    %81 = math.exp %80 : vector<1x8x8xf32>
    %cst_38 = arith.constant dense<0.000000e+00> : vector<1x8xf32>
    %82 = vector.multi_reduction <add>, %81, %cst_38 [2] : vector<1x8x8xf32> to vector<1x8xf32>
    %83 = vector.shape_cast %82 : vector<1x8xf32> to vector<1x8x1xf32>
    %84 = tpu.reciprocal %83 {approx = true} : vector<1x8x1xf32> -> vector<1x8x1xf32>
    %85 = vector.broadcast %84 : vector<1x8x1xf32> to vector<1x8x8xf32>
    %86 = arith.mulf %81, %85 : vector<1x8x8xf32>
    %87 = arith.truncf %86 : vector<1x8x8xf32> to vector<1x8x8xbf16>
    "tpu.trace_start"() <{level = 10 : i32, message = "bqk,bkd->bqd"}> : () -> ()
    %cst_39 = arith.constant dense<0.000000e+00> : vector<1x8x8xf32>
    %88 = tpu.matmul %87, %74, %cst_39 {dimension_numbers = #tpu.dot_dimension_numbers<[2], [1], [1], [2], [0, 0, 0, 1, 1, 2], [0], [0]>} : vector<1x8x8xbf16>, vector<1x8x8xbf16>, vector<1x8x8xf32> -> vector<1x8x8xf32>
    "tpu.trace_stop"() : () -> ()
    %89 = vector.extract_strided_slice %46 {offsets = [0, 0, 16], sizes = [1, 8, 8], strides = [1, 1, 1]} : vector<1x8x32xf32> to vector<1x8x8xf32>
    %90 = arith.truncf %89 : vector<1x8x8xf32> to vector<1x8x8xbf16>
    %91 = vector.extract_strided_slice %47 {offsets = [0, 0, 16], sizes = [1, 8, 8], strides = [1, 1, 1]} : vector<1x8x32xf32> to vector<1x8x8xf32>
    %92 = arith.truncf %91 : vector<1x8x8xf32> to vector<1x8x8xbf16>
    %93 = vector.extract_strided_slice %48 {offsets = [0, 0, 16], sizes = [1, 8, 8], strides = [1, 1, 1]} : vector<1x8x32xf32> to vector<1x8x8xf32>
    %94 = arith.truncf %93 : vector<1x8x8xf32> to vector<1x8x8xbf16>
    "tpu.trace_start"() <{level = 10 : i32, message = "bqd,bkd->bqk"}> : () -> ()
    %cst_40 = arith.constant dense<0.000000e+00> : vector<1x8x8xf32>
    %95 = tpu.matmul %90, %92, %cst_40 {dimension_numbers = #tpu.dot_dimension_numbers<[2], [2], [1], [1], [0, 0, 0, 1, 1, 1], [0], [0]>} : vector<1x8x8xbf16>, vector<1x8x8xbf16>, vector<1x8x8xf32> -> vector<1x8x8xf32>
    "tpu.trace_stop"() : () -> ()
    %96 = arith.addf %95, %27 : vector<1x8x8xf32>
    %cst_41 = arith.constant dense<0xFF800000> : vector<1x8xf32>
    %97 = vector.multi_reduction <maximumf>, %96, %cst_41 [2] : vector<1x8x8xf32> to vector<1x8xf32>
    %98 = vector.shape_cast %97 : vector<1x8xf32> to vector<1x8x1xf32>
    %99 = vector.broadcast %98 : vector<1x8x1xf32> to vector<1x8x8xf32>
    %100 = arith.subf %96, %99 : vector<1x8x8xf32>
    %101 = math.exp %100 : vector<1x8x8xf32>
    %cst_42 = arith.constant dense<0.000000e+00> : vector<1x8xf32>
    %102 = vector.multi_reduction <add>, %101, %cst_42 [2] : vector<1x8x8xf32> to vector<1x8xf32>
    %103 = vector.shape_cast %102 : vector<1x8xf32> to vector<1x8x1xf32>
    %104 = tpu.reciprocal %103 {approx = true} : vector<1x8x1xf32> -> vector<1x8x1xf32>
    %105 = vector.broadcast %104 : vector<1x8x1xf32> to vector<1x8x8xf32>
    %106 = arith.mulf %101, %105 : vector<1x8x8xf32>
    %107 = arith.truncf %106 : vector<1x8x8xf32> to vector<1x8x8xbf16>
    "tpu.trace_start"() <{level = 10 : i32, message = "bqk,bkd->bqd"}> : () -> ()
    %cst_43 = arith.constant dense<0.000000e+00> : vector<1x8x8xf32>
    %108 = tpu.matmul %107, %94, %cst_43 {dimension_numbers = #tpu.dot_dimension_numbers<[2], [1], [1], [2], [0, 0, 0, 1, 1, 2], [0], [0]>} : vector<1x8x8xbf16>, vector<1x8x8xbf16>, vector<1x8x8xf32> -> vector<1x8x8xf32>
    "tpu.trace_stop"() : () -> ()
    %109 = vector.extract_strided_slice %46 {offsets = [0, 0, 24], sizes = [1, 8, 8], strides = [1, 1, 1]} : vector<1x8x32xf32> to vector<1x8x8xf32>
    %110 = arith.truncf %109 : vector<1x8x8xf32> to vector<1x8x8xbf16>
    %111 = vector.extract_strided_slice %47 {offsets = [0, 0, 24], sizes = [1, 8, 8], strides = [1, 1, 1]} : vector<1x8x32xf32> to vector<1x8x8xf32>
    %112 = arith.truncf %111 : vector<1x8x8xf32> to vector<1x8x8xbf16>
    %113 = vector.extract_strided_slice %48 {offsets = [0, 0, 24], sizes = [1, 8, 8], strides = [1, 1, 1]} : vector<1x8x32xf32> to vector<1x8x8xf32>
    %114 = arith.truncf %113 : vector<1x8x8xf32> to vector<1x8x8xbf16>
    "tpu.trace_start"() <{level = 10 : i32, message = "bqd,bkd->bqk"}> : () -> ()
    %cst_44 = arith.constant dense<0.000000e+00> : vector<1x8x8xf32>
    %115 = tpu.matmul %110, %112, %cst_44 {dimension_numbers = #tpu.dot_dimension_numbers<[2], [2], [1], [1], [0, 0, 0, 1, 1, 1], [0], [0]>} : vector<1x8x8xbf16>, vector<1x8x8xbf16>, vector<1x8x8xf32> -> vector<1x8x8xf32>
    "tpu.trace_stop"() : () -> ()
    %116 = arith.addf %115, %27 : vector<1x8x8xf32>
    %cst_45 = arith.constant dense<0xFF800000> : vector<1x8xf32>
    %117 = vector.multi_reduction <maximumf>, %116, %cst_45 [2] : vector<1x8x8xf32> to vector<1x8xf32>
    %118 = vector.shape_cast %117 : vector<1x8xf32> to vector<1x8x1xf32>
    %119 = vector.broadcast %118 : vector<1x8x1xf32> to vector<1x8x8xf32>
    %120 = arith.subf %116, %119 : vector<1x8x8xf32>
    %121 = math.exp %120 : vector<1x8x8xf32>
    %cst_46 = arith.constant dense<0.000000e+00> : vector<1x8xf32>
    %122 = vector.multi_reduction <add>, %121, %cst_46 [2] : vector<1x8x8xf32> to vector<1x8xf32>
    %123 = vector.shape_cast %122 : vector<1x8xf32> to vector<1x8x1xf32>
    %124 = tpu.reciprocal %123 {approx = true} : vector<1x8x1xf32> -> vector<1x8x1xf32>
    %125 = vector.broadcast %124 : vector<1x8x1xf32> to vector<1x8x8xf32>
    %126 = arith.mulf %121, %125 : vector<1x8x8xf32>
    %127 = arith.truncf %126 : vector<1x8x8xf32> to vector<1x8x8xbf16>
    "tpu.trace_start"() <{level = 10 : i32, message = "bqk,bkd->bqd"}> : () -> ()
    %cst_47 = arith.constant dense<0.000000e+00> : vector<1x8x8xf32>
    %128 = tpu.matmul %127, %114, %cst_47 {dimension_numbers = #tpu.dot_dimension_numbers<[2], [1], [1], [2], [0, 0, 0, 1, 1, 2], [0], [0]>} : vector<1x8x8xbf16>, vector<1x8x8xbf16>, vector<1x8x8xf32> -> vector<1x8x8xf32>
    "tpu.trace_stop"() : () -> ()
    %129 = tpu.concatenate %68, %88, %108, %128 in 2 : vector<1x8x8xf32>, vector<1x8x8xf32>, vector<1x8x8xf32>, vector<1x8x8xf32> -> vector<1x8x32xf32>
    %130 = vector.shape_cast %129 : vector<1x8x32xf32> to vector<8x32xf32>
    %131 = arith.truncf %130 : vector<8x32xf32> to vector<8x32xbf16>
    %cst_48 = arith.constant dense<0.000000e+00> : vector<8x32xf32>
    %132 = tpu.matmul %131, %34, %cst_48 {dimension_numbers = #tpu.dot_dimension_numbers<[1], [0], [0], [1], [0, 0, 1, 1], [], []>} : vector<8x32xbf16>, vector<32x32xbf16>, vector<8x32xf32> -> vector<8x32xf32>
    %133 = vector.broadcast %35 : vector<1x32xf32> to vector<8x32xf32>
    %134 = arith.addf %132, %133 : vector<8x32xf32>
    %135 = arith.addf %134, %0 : vector<8x32xf32>
    %c0_49 = arith.constant 0 : index
    %c0_50 = arith.constant 0 : index
    %136 = vector.load %arg15[%c0_49, %c0_50] : memref<1x32xf32, #tpu.memory_space<vmem>>, vector<1x32xf32>
    %c0_51 = arith.constant 0 : index
    %c0_52 = arith.constant 0 : index
    %137 = vector.load %arg16[%c0_51, %c0_52] : memref<1x32xf32, #tpu.memory_space<vmem>>, vector<1x32xf32>
    %cst_53 = arith.constant dense<0.000000e+00> : vector<8xf32>
    %138 = vector.multi_reduction <add>, %135, %cst_53 [1] : vector<8x32xf32> to vector<8xf32>
    %139 = vector.shape_cast %138 : vector<8xf32> to vector<8x1xf32>
    %cst_54 = arith.constant 3.200000e+01 : f32
    %140 = vector.broadcast %cst_54 : f32 to vector<8x1xf32>
    %141 = arith.divf %139, %140 : vector<8x1xf32>
    %142 = vector.broadcast %141 : vector<8x1xf32> to vector<8x32xf32>
    %143 = arith.subf %135, %142 : vector<8x32xf32>
    %144 = arith.mulf %143, %143 : vector<8x32xf32>
    %cst_55 = arith.constant dense<0.000000e+00> : vector<8xf32>
    %145 = vector.multi_reduction <add>, %144, %cst_55 [1] : vector<8x32xf32> to vector<8xf32>
    %146 = vector.shape_cast %145 : vector<8xf32> to vector<8x1xf32>
    %cst_56 = arith.constant 3.200000e+01 : f32
    %147 = vector.broadcast %cst_56 : f32 to vector<8x1xf32>
    %148 = arith.divf %146, %147 : vector<8x1xf32>
    %149 = vector.broadcast %141 : vector<8x1xf32> to vector<8x32xf32>
    %150 = arith.subf %135, %149 : vector<8x32xf32>
    %cst_57 = arith.constant 9.99999974E-6 : f32
    %151 = vector.broadcast %cst_57 : f32 to vector<8x1xf32>
    %152 = arith.addf %148, %151 : vector<8x1xf32>
    %153 = math.rsqrt %152 : vector<8x1xf32>
    %154 = vector.broadcast %153 : vector<8x1xf32> to vector<8x32xf32>
    %155 = arith.mulf %150, %154 : vector<8x32xf32>
    %156 = vector.broadcast %136 : vector<1x32xf32> to vector<8x32xf32>
    %157 = arith.mulf %155, %156 : vector<8x32xf32>
    %158 = vector.broadcast %137 : vector<1x32xf32> to vector<8x32xf32>
    %159 = arith.addf %157, %158 : vector<8x32xf32>
    %c0_58 = arith.constant 0 : index
    %c0_59 = arith.constant 0 : index
    %c0_60 = arith.constant 0 : index
    %160 = vector.load %arg3[%c0_58, %c0_59, %c0_60] : memref<1x1x16xf32, #tpu.memory_space<vmem>>, vector<1x1x16xf32>
    %c0_61 = arith.constant 0 : index
    %c0_62 = arith.constant 0 : index
    %161 = vector.load %arg17[%c0_61, %c0_62] : memref<32x32xbf16, #tpu.memory_space<vmem>>, vector<32x32xbf16>
    %c0_63 = arith.constant 0 : index
    %c0_64 = arith.constant 0 : index
    %162 = vector.load %arg18[%c0_63, %c0_64] : memref<1x32xf32, #tpu.memory_space<vmem>>, vector<1x32xf32>
    %c0_65 = arith.constant 0 : index
    %c0_66 = arith.constant 0 : index
    %163 = vector.load %arg19[%c0_65, %c0_66] : memref<32x32xbf16, #tpu.memory_space<vmem>>, vector<32x32xbf16>
    %c0_67 = arith.constant 0 : index
    %c0_68 = arith.constant 0 : index
    %164 = vector.load %arg20[%c0_67, %c0_68] : memref<1x32xf32, #tpu.memory_space<vmem>>, vector<1x32xf32>
    %c0_69 = arith.constant 0 : index
    %c0_70 = arith.constant 0 : index
    %165 = vector.load %arg21[%c0_69, %c0_70] : memref<32x32xbf16, #tpu.memory_space<vmem>>, vector<32x32xbf16>
    %c0_71 = arith.constant 0 : index
    %c0_72 = arith.constant 0 : index
    %166 = vector.load %arg22[%c0_71, %c0_72] : memref<1x32xf32, #tpu.memory_space<vmem>>, vector<1x32xf32>
    %c0_73 = arith.constant 0 : index
    %c0_74 = arith.constant 0 : index
    %167 = vector.load %arg23[%c0_73, %c0_74] : memref<32x32xbf16, #tpu.memory_space<vmem>>, vector<32x32xbf16>
    %c0_75 = arith.constant 0 : index
    %c0_76 = arith.constant 0 : index
    %168 = vector.load %arg24[%c0_75, %c0_76] : memref<1x32xf32, #tpu.memory_space<vmem>>, vector<1x32xf32>
    %169 = arith.truncf %159 : vector<8x32xf32> to vector<8x32xbf16>
    %170 = arith.truncf %1 : vector<16x32xf32> to vector<16x32xbf16>
    %cst_77 = arith.constant dense<0.000000e+00> : vector<8x32xf32>
    %171 = tpu.matmul %169, %161, %cst_77 {dimension_numbers = #tpu.dot_dimension_numbers<[1], [0], [0], [1], [0, 0, 1, 1], [], []>} : vector<8x32xbf16>, vector<32x32xbf16>, vector<8x32xf32> -> vector<8x32xf32>
    %172 = vector.broadcast %162 : vector<1x32xf32> to vector<8x32xf32>
    %173 = arith.addf %171, %172 : vector<8x32xf32>
    %cst_78 = arith.constant dense<0.000000e+00> : vector<16x32xf32>
    %174 = tpu.matmul %170, %163, %cst_78 {dimension_numbers = #tpu.dot_dimension_numbers<[1], [0], [0], [1], [0, 0, 1, 1], [], []>} : vector<16x32xbf16>, vector<32x32xbf16>, vector<16x32xf32> -> vector<16x32xf32>
    %175 = vector.broadcast %164 : vector<1x32xf32> to vector<16x32xf32>
    %176 = arith.addf %174, %175 : vector<16x32xf32>
    %cst_79 = arith.constant dense<0.000000e+00> : vector<16x32xf32>
    %177 = tpu.matmul %170, %165, %cst_79 {dimension_numbers = #tpu.dot_dimension_numbers<[1], [0], [0], [1], [0, 0, 1, 1], [], []>} : vector<16x32xbf16>, vector<32x32xbf16>, vector<16x32xf32> -> vector<16x32xf32>
    %178 = vector.broadcast %166 : vector<1x32xf32> to vector<16x32xf32>
    %179 = arith.addf %177, %178 : vector<16x32xf32>
    %180 = vector.shape_cast %173 : vector<8x32xf32> to vector<1x8x32xf32>
    %181 = vector.shape_cast %176 : vector<16x32xf32> to vector<1x16x32xf32>
    %182 = vector.shape_cast %179 : vector<16x32xf32> to vector<1x16x32xf32>
    %183 = vector.shape_cast %160 : vector<1x1x16xf32> to vector<1x1x16xf32>
    %184 = vector.broadcast %183 : vector<1x1x16xf32> to vector<1x8x16xf32>
    %185 = vector.extract_strided_slice %180 {offsets = [0, 0, 0], sizes = [1, 8, 8], strides = [1, 1, 1]} : vector<1x8x32xf32> to vector<1x8x8xf32>
    %186 = arith.truncf %185 : vector<1x8x8xf32> to vector<1x8x8xbf16>
    %187 = vector.extract_strided_slice %181 {offsets = [0, 0, 0], sizes = [1, 16, 8], strides = [1, 1, 1]} : vector<1x16x32xf32> to vector<1x16x8xf32>
    %188 = arith.truncf %187 : vector<1x16x8xf32> to vector<1x16x8xbf16>
    %189 = vector.extract_strided_slice %182 {offsets = [0, 0, 0], sizes = [1, 16, 8], strides = [1, 1, 1]} : vector<1x16x32xf32> to vector<1x16x8xf32>
    %190 = arith.truncf %189 : vector<1x16x8xf32> to vector<1x16x8xbf16>
    "tpu.trace_start"() <{level = 10 : i32, message = "bqd,bkd->bqk"}> : () -> ()
    %cst_80 = arith.constant dense<0.000000e+00> : vector<1x8x16xf32>
    %191 = tpu.matmul %186, %188, %cst_80 {dimension_numbers = #tpu.dot_dimension_numbers<[2], [2], [1], [1], [0, 0, 0, 1, 1, 1], [0], [0]>} : vector<1x8x8xbf16>, vector<1x16x8xbf16>, vector<1x8x16xf32> -> vector<1x8x16xf32>
    "tpu.trace_stop"() : () -> ()
    %192 = arith.addf %191, %184 : vector<1x8x16xf32>
    %cst_81 = arith.constant dense<0xFF800000> : vector<1x8xf32>
    %193 = vector.multi_reduction <maximumf>, %192, %cst_81 [2] : vector<1x8x16xf32> to vector<1x8xf32>
    %194 = vector.shape_cast %193 : vector<1x8xf32> to vector<1x8x1xf32>
    %195 = vector.broadcast %194 : vector<1x8x1xf32> to vector<1x8x16xf32>
    %196 = arith.subf %192, %195 : vector<1x8x16xf32>
    %197 = math.exp %196 : vector<1x8x16xf32>
    %cst_82 = arith.constant dense<0.000000e+00> : vector<1x8xf32>
    %198 = vector.multi_reduction <add>, %197, %cst_82 [2] : vector<1x8x16xf32> to vector<1x8xf32>
    %199 = vector.shape_cast %198 : vector<1x8xf32> to vector<1x8x1xf32>
    %200 = tpu.reciprocal %199 {approx = true} : vector<1x8x1xf32> -> vector<1x8x1xf32>
    %201 = vector.broadcast %200 : vector<1x8x1xf32> to vector<1x8x16xf32>
    %202 = arith.mulf %197, %201 : vector<1x8x16xf32>
    %203 = arith.truncf %202 : vector<1x8x16xf32> to vector<1x8x16xbf16>
    "tpu.trace_start"() <{level = 10 : i32, message = "bqk,bkd->bqd"}> : () -> ()
    %cst_83 = arith.constant dense<0.000000e+00> : vector<1x8x8xf32>
    %204 = tpu.matmul %203, %190, %cst_83 {dimension_numbers = #tpu.dot_dimension_numbers<[2], [1], [1], [2], [0, 0, 0, 1, 1, 2], [0], [0]>} : vector<1x8x16xbf16>, vector<1x16x8xbf16>, vector<1x8x8xf32> -> vector<1x8x8xf32>
    "tpu.trace_stop"() : () -> ()
    %205 = vector.extract_strided_slice %180 {offsets = [0, 0, 8], sizes = [1, 8, 8], strides = [1, 1, 1]} : vector<1x8x32xf32> to vector<1x8x8xf32>
    %206 = arith.truncf %205 : vector<1x8x8xf32> to vector<1x8x8xbf16>
    %207 = vector.extract_strided_slice %181 {offsets = [0, 0, 8], sizes = [1, 16, 8], strides = [1, 1, 1]} : vector<1x16x32xf32> to vector<1x16x8xf32>
    %208 = arith.truncf %207 : vector<1x16x8xf32> to vector<1x16x8xbf16>
    %209 = vector.extract_strided_slice %182 {offsets = [0, 0, 8], sizes = [1, 16, 8], strides = [1, 1, 1]} : vector<1x16x32xf32> to vector<1x16x8xf32>
    %210 = arith.truncf %209 : vector<1x16x8xf32> to vector<1x16x8xbf16>
    "tpu.trace_start"() <{level = 10 : i32, message = "bqd,bkd->bqk"}> : () -> ()
    %cst_84 = arith.constant dense<0.000000e+00> : vector<1x8x16xf32>
    %211 = tpu.matmul %206, %208, %cst_84 {dimension_numbers = #tpu.dot_dimension_numbers<[2], [2], [1], [1], [0, 0, 0, 1, 1, 1], [0], [0]>} : vector<1x8x8xbf16>, vector<1x16x8xbf16>, vector<1x8x16xf32> -> vector<1x8x16xf32>
    "tpu.trace_stop"() : () -> ()
    %212 = arith.addf %211, %184 : vector<1x8x16xf32>
    %cst_85 = arith.constant dense<0xFF800000> : vector<1x8xf32>
    %213 = vector.multi_reduction <maximumf>, %212, %cst_85 [2] : vector<1x8x16xf32> to vector<1x8xf32>
    %214 = vector.shape_cast %213 : vector<1x8xf32> to vector<1x8x1xf32>
    %215 = vector.broadcast %214 : vector<1x8x1xf32> to vector<1x8x16xf32>
    %216 = arith.subf %212, %215 : vector<1x8x16xf32>
    %217 = math.exp %216 : vector<1x8x16xf32>
    %cst_86 = arith.constant dense<0.000000e+00> : vector<1x8xf32>
    %218 = vector.multi_reduction <add>, %217, %cst_86 [2] : vector<1x8x16xf32> to vector<1x8xf32>
    %219 = vector.shape_cast %218 : vector<1x8xf32> to vector<1x8x1xf32>
    %220 = tpu.reciprocal %219 {approx = true} : vector<1x8x1xf32> -> vector<1x8x1xf32>
    %221 = vector.broadcast %220 : vector<1x8x1xf32> to vector<1x8x16xf32>
    %222 = arith.mulf %217, %221 : vector<1x8x16xf32>
    %223 = arith.truncf %222 : vector<1x8x16xf32> to vector<1x8x16xbf16>
    "tpu.trace_start"() <{level = 10 : i32, message = "bqk,bkd->bqd"}> : () -> ()
    %cst_87 = arith.constant dense<0.000000e+00> : vector<1x8x8xf32>
    %224 = tpu.matmul %223, %210, %cst_87 {dimension_numbers = #tpu.dot_dimension_numbers<[2], [1], [1], [2], [0, 0, 0, 1, 1, 2], [0], [0]>} : vector<1x8x16xbf16>, vector<1x16x8xbf16>, vector<1x8x8xf32> -> vector<1x8x8xf32>
    "tpu.trace_stop"() : () -> ()
    %225 = vector.extract_strided_slice %180 {offsets = [0, 0, 16], sizes = [1, 8, 8], strides = [1, 1, 1]} : vector<1x8x32xf32> to vector<1x8x8xf32>
    %226 = arith.truncf %225 : vector<1x8x8xf32> to vector<1x8x8xbf16>
    %227 = vector.extract_strided_slice %181 {offsets = [0, 0, 16], sizes = [1, 16, 8], strides = [1, 1, 1]} : vector<1x16x32xf32> to vector<1x16x8xf32>
    %228 = arith.truncf %227 : vector<1x16x8xf32> to vector<1x16x8xbf16>
    %229 = vector.extract_strided_slice %182 {offsets = [0, 0, 16], sizes = [1, 16, 8], strides = [1, 1, 1]} : vector<1x16x32xf32> to vector<1x16x8xf32>
    %230 = arith.truncf %229 : vector<1x16x8xf32> to vector<1x16x8xbf16>
    "tpu.trace_start"() <{level = 10 : i32, message = "bqd,bkd->bqk"}> : () -> ()
    %cst_88 = arith.constant dense<0.000000e+00> : vector<1x8x16xf32>
    %231 = tpu.matmul %226, %228, %cst_88 {dimension_numbers = #tpu.dot_dimension_numbers<[2], [2], [1], [1], [0, 0, 0, 1, 1, 1], [0], [0]>} : vector<1x8x8xbf16>, vector<1x16x8xbf16>, vector<1x8x16xf32> -> vector<1x8x16xf32>
    "tpu.trace_stop"() : () -> ()
    %232 = arith.addf %231, %184 : vector<1x8x16xf32>
    %cst_89 = arith.constant dense<0xFF800000> : vector<1x8xf32>
    %233 = vector.multi_reduction <maximumf>, %232, %cst_89 [2] : vector<1x8x16xf32> to vector<1x8xf32>
    %234 = vector.shape_cast %233 : vector<1x8xf32> to vector<1x8x1xf32>
    %235 = vector.broadcast %234 : vector<1x8x1xf32> to vector<1x8x16xf32>
    %236 = arith.subf %232, %235 : vector<1x8x16xf32>
    %237 = math.exp %236 : vector<1x8x16xf32>
    %cst_90 = arith.constant dense<0.000000e+00> : vector<1x8xf32>
    %238 = vector.multi_reduction <add>, %237, %cst_90 [2] : vector<1x8x16xf32> to vector<1x8xf32>
    %239 = vector.shape_cast %238 : vector<1x8xf32> to vector<1x8x1xf32>
    %240 = tpu.reciprocal %239 {approx = true} : vector<1x8x1xf32> -> vector<1x8x1xf32>
    %241 = vector.broadcast %240 : vector<1x8x1xf32> to vector<1x8x16xf32>
    %242 = arith.mulf %237, %241 : vector<1x8x16xf32>
    %243 = arith.truncf %242 : vector<1x8x16xf32> to vector<1x8x16xbf16>
    "tpu.trace_start"() <{level = 10 : i32, message = "bqk,bkd->bqd"}> : () -> ()
    %cst_91 = arith.constant dense<0.000000e+00> : vector<1x8x8xf32>
    %244 = tpu.matmul %243, %230, %cst_91 {dimension_numbers = #tpu.dot_dimension_numbers<[2], [1], [1], [2], [0, 0, 0, 1, 1, 2], [0], [0]>} : vector<1x8x16xbf16>, vector<1x16x8xbf16>, vector<1x8x8xf32> -> vector<1x8x8xf32>
    "tpu.trace_stop"() : () -> ()
    %245 = vector.extract_strided_slice %180 {offsets = [0, 0, 24], sizes = [1, 8, 8], strides = [1, 1, 1]} : vector<1x8x32xf32> to vector<1x8x8xf32>
    %246 = arith.truncf %245 : vector<1x8x8xf32> to vector<1x8x8xbf16>
    %247 = vector.extract_strided_slice %181 {offsets = [0, 0, 24], sizes = [1, 16, 8], strides = [1, 1, 1]} : vector<1x16x32xf32> to vector<1x16x8xf32>
    %248 = arith.truncf %247 : vector<1x16x8xf32> to vector<1x16x8xbf16>
    %249 = vector.extract_strided_slice %182 {offsets = [0, 0, 24], sizes = [1, 16, 8], strides = [1, 1, 1]} : vector<1x16x32xf32> to vector<1x16x8xf32>
    %250 = arith.truncf %249 : vector<1x16x8xf32> to vector<1x16x8xbf16>
    "tpu.trace_start"() <{level = 10 : i32, message = "bqd,bkd->bqk"}> : () -> ()
    %cst_92 = arith.constant dense<0.000000e+00> : vector<1x8x16xf32>
    %251 = tpu.matmul %246, %248, %cst_92 {dimension_numbers = #tpu.dot_dimension_numbers<[2], [2], [1], [1], [0, 0, 0, 1, 1, 1], [0], [0]>} : vector<1x8x8xbf16>, vector<1x16x8xbf16>, vector<1x8x16xf32> -> vector<1x8x16xf32>
    "tpu.trace_stop"() : () -> ()
    %252 = arith.addf %251, %184 : vector<1x8x16xf32>
    %cst_93 = arith.constant dense<0xFF800000> : vector<1x8xf32>
    %253 = vector.multi_reduction <maximumf>, %252, %cst_93 [2] : vector<1x8x16xf32> to vector<1x8xf32>
    %254 = vector.shape_cast %253 : vector<1x8xf32> to vector<1x8x1xf32>
    %255 = vector.broadcast %254 : vector<1x8x1xf32> to vector<1x8x16xf32>
    %256 = arith.subf %252, %255 : vector<1x8x16xf32>
    %257 = math.exp %256 : vector<1x8x16xf32>
    %cst_94 = arith.constant dense<0.000000e+00> : vector<1x8xf32>
    %258 = vector.multi_reduction <add>, %257, %cst_94 [2] : vector<1x8x16xf32> to vector<1x8xf32>
    %259 = vector.shape_cast %258 : vector<1x8xf32> to vector<1x8x1xf32>
    %260 = tpu.reciprocal %259 {approx = true} : vector<1x8x1xf32> -> vector<1x8x1xf32>
    %261 = vector.broadcast %260 : vector<1x8x1xf32> to vector<1x8x16xf32>
    %262 = arith.mulf %257, %261 : vector<1x8x16xf32>
    %263 = arith.truncf %262 : vector<1x8x16xf32> to vector<1x8x16xbf16>
    "tpu.trace_start"() <{level = 10 : i32, message = "bqk,bkd->bqd"}> : () -> ()
    %cst_95 = arith.constant dense<0.000000e+00> : vector<1x8x8xf32>
    %264 = tpu.matmul %263, %250, %cst_95 {dimension_numbers = #tpu.dot_dimension_numbers<[2], [1], [1], [2], [0, 0, 0, 1, 1, 2], [0], [0]>} : vector<1x8x16xbf16>, vector<1x16x8xbf16>, vector<1x8x8xf32> -> vector<1x8x8xf32>
    "tpu.trace_stop"() : () -> ()
    %265 = tpu.concatenate %204, %224, %244, %264 in 2 : vector<1x8x8xf32>, vector<1x8x8xf32>, vector<1x8x8xf32>, vector<1x8x8xf32> -> vector<1x8x32xf32>
    %266 = vector.shape_cast %265 : vector<1x8x32xf32> to vector<8x32xf32>
    %267 = arith.truncf %266 : vector<8x32xf32> to vector<8x32xbf16>
    %cst_96 = arith.constant dense<0.000000e+00> : vector<8x32xf32>
    %268 = tpu.matmul %267, %167, %cst_96 {dimension_numbers = #tpu.dot_dimension_numbers<[1], [0], [0], [1], [0, 0, 1, 1], [], []>} : vector<8x32xbf16>, vector<32x32xbf16>, vector<8x32xf32> -> vector<8x32xf32>
    %269 = vector.broadcast %168 : vector<1x32xf32> to vector<8x32xf32>
    %270 = arith.addf %268, %269 : vector<8x32xf32>
    %271 = arith.addf %270, %135 : vector<8x32xf32>
    %272 = arith.truncf %271 : vector<8x32xf32> to vector<8x32xbf16>
    %c0_97 = arith.constant 0 : index
    %c0_98 = arith.constant 0 : index
    %273 = vector.load %arg25[%c0_97, %c0_98] : memref<32x64xbf16, #tpu.memory_space<vmem>>, vector<32x64xbf16>
    %cst_99 = arith.constant dense<0.000000e+00> : vector<8x64xf32>
    %274 = tpu.matmul %272, %273, %cst_99 {dimension_numbers = #tpu.dot_dimension_numbers<[1], [0], [0], [1], [0, 0, 1, 1], [], []>} : vector<8x32xbf16>, vector<32x64xbf16>, vector<8x64xf32> -> vector<8x64xf32>
    %c0_100 = arith.constant 0 : index
    %c0_101 = arith.constant 0 : index
    %275 = vector.load %arg26[%c0_100, %c0_101] : memref<1x64xf32, #tpu.memory_space<vmem>>, vector<1x64xf32>
    %276 = vector.broadcast %275 : vector<1x64xf32> to vector<8x64xf32>
    %277 = arith.addf %274, %276 : vector<8x64xf32>
    %cst_102 = arith.constant 0.000000e+00 : f32
    %278 = vector.broadcast %cst_102 : f32 to vector<8x64xf32>
    %279 = arith.maximumf %277, %278 : vector<8x64xf32>
    %280 = arith.truncf %279 : vector<8x64xf32> to vector<8x64xbf16>
    %c0_103 = arith.constant 0 : index
    %c0_104 = arith.constant 0 : index
    %281 = vector.load %arg27[%c0_103, %c0_104] : memref<64x32xbf16, #tpu.memory_space<vmem>>, vector<64x32xbf16>
    %cst_105 = arith.constant dense<0.000000e+00> : vector<8x32xf32>
    %282 = tpu.matmul %280, %281, %cst_105 {dimension_numbers = #tpu.dot_dimension_numbers<[1], [0], [0], [1], [0, 0, 1, 1], [], []>} : vector<8x64xbf16>, vector<64x32xbf16>, vector<8x32xf32> -> vector<8x32xf32>
    %c0_106 = arith.constant 0 : index
    %c0_107 = arith.constant 0 : index
    %283 = vector.load %arg28[%c0_106, %c0_107] : memref<1x32xf32, #tpu.memory_space<vmem>>, vector<1x32xf32>
    %284 = vector.broadcast %283 : vector<1x32xf32> to vector<8x32xf32>
    %285 = arith.addf %282, %284 : vector<8x32xf32>
    %c0_108 = arith.constant 0 : index
    %c0_109 = arith.constant 0 : index
    %286 = vector.load %arg29[%c0_108, %c0_109] : memref<8x32xf32, #tpu.memory_space<vmem>>, vector<8x32xf32>
    tpu.vector_store %arg29[%c0_108, %c0_109], %285 {strides = array<i32>} : memref<8x32xf32, #tpu.memory_space<vmem>>, vector<8x32xf32>,
    return
  }
  func.func @transform_0(%arg0: i32) -> (i32, i32) {
    %c0_i32 = arith.constant 0 : i32
    %c0_i32_0 = arith.constant 0 : i32
    return %arg0, %c0_i32 : i32, i32
  }
  func.func @transform_1(%arg0: i32) -> (i32, i32) {
    %c0_i32 = arith.constant 0 : i32
    %c0_i32_0 = arith.constant 0 : i32
    return %arg0, %c0_i32 : i32, i32
  }
  func.func @transform_2(%arg0: i32) -> (i32, i32, i32) {
    %c0_i32 = arith.constant 0 : i32
    %c0_i32_0 = arith.constant 0 : i32
    %c0_i32_1 = arith.constant 0 : i32
    return %arg0, %c0_i32, %c0_i32_0 : i32, i32, i32
  }
  func.func @transform_3(%arg0: i32) -> (i32, i32) {
    %c0_i32 = arith.constant 0 : i32
    %c0_i32_0 = arith.constant 0 : i32
    %c0_i32_1 = arith.constant 0 : i32
    return %c0_i32, %c0_i32_0 : i32, i32
  }
  func.func @transform_4(%arg0: i32) -> (i32, i32) {
    %c0_i32 = arith.constant 0 : i32
    %c0_i32_0 = arith.constant 0 : i32
    %c0_i32_1 = arith.constant 0 : i32
    return %c0_i32, %c0_i32_0 : i32, i32
  }
  func.func @transform_5(%arg0: i32) -> (i32, i32) {
    %c0_i32 = arith.constant 0 : i32
    %c0_i32_0 = arith.constant 0 : i32
    %c0_i32_1 = arith.constant 0 : i32
    return %c0_i32, %c0_i32_0 : i32, i32
  }
  func.func @transform_6(%arg0: i32) -> (i32, i32) {
    %c0_i32 = arith.constant 0 : i32
    %c0_i32_0 = arith.constant 0 : i32
    %c0_i32_1 = arith.constant 0 : i32
    return %c0_i32, %c0_i32_0 : i32, i32
  }
  func.func @transform_7(%arg0: i32) -> (i32, i32) {
    %c0_i32 = arith.constant 0 : i32
    %c0_i32_0 = arith.constant 0 : i32
    %c0_i32_1 = arith.constant 0 : i32
    return %c0_i32, %c0_i32_0 : i32, i32
  }
  func.func @transform_8(%arg0: i32) -> (i32, i32) {
    %c0_i32 = arith.constant 0 : i32
    %c0_i32_0 = arith.constant 0 : i32
    %c0_i32_1 = arith.constant 0 : i32
    return %c0_i32, %c0_i32_0 : i32, i32
  }
  func.func @transform_9(%arg0: i32) -> (i32, i32) {
    %c0_i32 = arith.constant 0 : i32
    %c0_i32_0 = arith.constant 0 : i32
    %c0_i32_1 = arith.constant 0 : i32
    return %c0_i32, %c0_i32_0 : i32, i32
  }
  func.func @transform_10(%arg0: i32) -> (i32, i32) {
    %c0_i32 = arith.constant 0 : i32
    %c0_i32_0 = arith.constant 0 : i32
    %c0_i32_1 = arith.constant 0 : i32
    return %c0_i32, %c0_i32_0 : i32, i32
  }
  func.func @transform_11(%arg0: i32) -> (i32, i32) {
    %c0_i32 = arith.constant 0 : i32
    %c0_i32_0 = arith.constant 0 : i32
    %c0_i32_1 = arith.constant 0 : i32
    return %c0_i32, %c0_i32_0 : i32, i32
  }
  func.func @transform_12(%arg0: i32) -> (i32, i32) {
    %c0_i32 = arith.constant 0 : i32
    %c0_i32_0 = arith.constant 0 : i32
    %c0_i32_1 = arith.constant 0 : i32
    return %c0_i32, %c0_i32_0 : i32, i32
  }
  func.func @transform_13(%arg0: i32) -> (i32, i32) {
    %c0_i32 = arith.constant 0 : i32
    %c0_i32_0 = arith.constant 0 : i32
    %c0_i32_1 = arith.constant 0 : i32
    return %c0_i32, %c0_i32_0 : i32, i32
  }
  func.func @transform_14(%arg0: i32) -> (i32, i32) {
    %c0_i32 = arith.constant 0 : i32
    %c0_i32_0 = arith.constant 0 : i32
    %c0_i32_1 = arith.constant 0 : i32
    return %c0_i32, %c0_i32_0 : i32, i32
  }
  func.func @transform_15(%arg0: i32) -> (i32, i32) {
    %c0_i32 = arith.constant 0 : i32
    %c0_i32_0 = arith.constant 0 : i32
    %c0_i32_1 = arith.constant 0 : i32
    return %c0_i32, %c0_i32_0 : i32, i32
  }
  func.func @transform_16(%arg0: i32) -> (i32, i32) {
    %c0_i32 = arith.constant 0 : i32
    %c0_i32_0 = arith.constant 0 : i32
    %c0_i32_1 = arith.constant 0 : i32
    return %c0_i32, %c0_i32_0 : i32, i32
  }
  func.func @transform_17(%arg0: i32) -> (i32, i32) {
    %c0_i32 = arith.constant 0 : i32
    %c0_i32_0 = arith.constant 0 : i32
    %c0_i32_1 = arith.constant 0 : i32
    return %c0_i32, %c0_i32_0 : i32, i32
  }
  func.func @transform_18(%arg0: i32) -> (i32, i32) {
    %c0_i32 = arith.constant 0 : i32
    %c0_i32_0 = arith.constant 0 : i32
    %c0_i32_1 = arith.constant 0 : i32
    return %c0_i32, %c0_i32_0 : i32, i32
  }
  func.func @transform_19(%arg0: i32) -> (i32, i32) {
    %c0_i32 = arith.constant 0 : i32
    %c0_i32_0 = arith.constant 0 : i32
    %c0_i32_1 = arith.constant 0 : i32
    return %c0_i32, %c0_i32_0 : i32, i32
  }
  func.func @transform_20(%arg0: i32) -> (i32, i32) {
    %c0_i32 = arith.constant 0 : i32
    %c0_i32_0 = arith.constant 0 : i32
    %c0_i32_1 = arith.constant 0 : i32
    return %c0_i32, %c0_i32_0 : i32, i32
  }
  func.func @transform_21(%arg0: i32) -> (i32, i32) {
    %c0_i32 = arith.constant 0 : i32
    %c0_i32_0 = arith.constant 0 : i32
    %c0_i32_1 = arith.constant 0 : i32
    return %c0_i32, %c0_i32_0 : i32, i32
  }
  func.func @transform_22(%arg0: i32) -> (i32, i32) {
    %c0_i32 = arith.constant 0 : i32
    %c0_i32_0 = arith.constant 0 : i32
    %c0_i32_1 = arith.constant 0 : i32
    return %c0_i32, %c0_i32_0 : i32, i32
  }
  func.func @transform_23(%arg0: i32) -> (i32, i32) {
    %c0_i32 = arith.constant 0 : i32
    %c0_i32_0 = arith.constant 0 : i32
    %c0_i32_1 = arith.constant 0 : i32
    return %c0_i32, %c0_i32_0 : i32, i32
  }
  func.func @transform_24(%arg0: i32) -> (i32, i32) {
    %c0_i32 = arith.constant 0 : i32
    %c0_i32_0 = arith.constant 0 : i32
    %c0_i32_1 = arith.constant 0 : i32
    return %c0_i32, %c0_i32_0 : i32, i32
  }
  func.func @transform_25(%arg0: i32) -> (i32, i32) {
    %c0_i32 = arith.constant 0 : i32
    %c0_i32_0 = arith.constant 0 : i32
    %c0_i32_1 = arith.constant 0 : i32
    return %c0_i32, %c0_i32_0 : i32, i32
  }
  func.func @transform_26(%arg0: i32) -> (i32, i32) {
    %c0_i32 = arith.constant 0 : i32
    %c0_i32_0 = arith.constant 0 : i32
    %c0_i32_1 = arith.constant 0 : i32
    return %c0_i32, %c0_i32_0 : i32, i32
  }
  func.func @transform_27(%arg0: i32) -> (i32, i32) {
    %c0_i32 = arith.constant 0 : i32
    %c0_i32_0 = arith.constant 0 : i32
    %c0_i32_1 = arith.constant 0 : i32
    return %c0_i32, %c0_i32_0 : i32, i32
  }
  func.func @transform_28(%arg0: i32) -> (i32, i32) {
    %c0_i32 = arith.constant 0 : i32
    %c0_i32_0 = arith.constant 0 : i32
    return %arg0, %c0_i32 : i32, i32
  }
}

</mosaic_0001>

<bundles_post_ra>
// kernel: tpu_custom_call.1
= control target key start
LH: loop header
LB: loop body
LE: loop exit
PB: predicated region body
PF: predicated region fallthrough
CT: control target
= control target key end

     0   :  { %s5149_s0 = inlined_call_operand.vmem [shape: f32[16,32], index: 0, kind: input, shape index: {}]   ;;  %s5150_s1 = inlined_call_operand.vmem [shape: f32[32,32], index: 1, kind: input, shape index: {}]   ;;  %s5151_s2 = inlined_call_operand.hbm [shape: f32[2,1,16], index: 2, kind: input, shape index: {}]   ;;  %s5152_s3 = inlined_call_operand.hbm [shape: f32[8,8], index: 3, kind: input, shape index: {}]   ;;  %s5153_s4 = inlined_call_operand.hbm [shape: f32[1,32], index: 4, kind: input, shape index: {}]   ;;  %s5154_s5 = inlined_call_operand.hbm [shape: f32[1,32], index: 5, kind: input, shape index: {}]   ;;  %s5155_s6 = inlined_call_operand.hbm [shape: bf16[32,32], index: 6, kind: input, shape index: {}]   ;;  %s5156_s7 = inlined_call_operand.hbm [shape: f32[1,32], index: 7, kind: input, shape index: {}]   ;;  %s5157_s8 = inlined_call_operand.hbm [shape: bf16[32,32], index: 8, kind: input, shape index: {}]   ;;  %s5158_s9 = inlined_call_operand.hbm [shape: f32[1,32], index: 9, kind: input, shape index: {}]   ;;  %s5159_s10 = inlined_call_operand.vmem [shape: bf16[32,32], index: 10, kind: input, shape index: {}]   ;;  %s5160_s11 = inlined_call_operand.hbm [shape: f32[1,32], index: 11, kind: input, shape index: {}]   ;;  %s5161_s12 = inlined_call_operand.hbm [shape: bf16[32,32], index: 12, kind: input, shape index: {}]   ;;  %s5162_s13 = inlined_call_operand.hbm [shape: f32[1,32], index: 13, kind: input, shape index: {}]   ;;  %s5163_s14 = inlined_call_operand.hbm [shape: f32[1,32], index: 14, kind: input, shape index: {}]   ;;  %s5164_s15 = inlined_call_operand.hbm [shape: f32[1,32], index: 15, kind: input, shape index: {}]   ;;  %s5165_s16 = inlined_call_operand.vmem [shape: bf16[32,32], index: 16, kind: input, shape index: {}]   ;;  %s5166_s17 = inlined_call_operand.hbm [shape: f32[1,32], index: 17, kind: input, shape index: {}]   ;;  %s5167_s18 = inlined_call_operand.vmem [shape: bf16[32,32], index: 18, kind: input, shape index: {}]   ;;  %s5168_s19 = inlined_call_operand.vmem [shape: f32[1,32], index: 19, kind: input, shape index: {}]   ;;  %s5169_s20 = inlined_call_operand.hbm [shape: bf16[32,32], index: 20, kind: input, shape index: {}]   ;;  %s5170_s21 = inlined_call_operand.vmem [shape: f32[1,32], index: 21, kind: input, shape index: {}]   ;;  %s5171_s22 = inlined_call_operand.vmem [shape: bf16[32,32], index: 22, kind: input, shape index: {}]   ;;  %s5172_s23 = inlined_call_operand.vmem [shape: f32[1,32], index: 23, kind: input, shape index: {}]   ;;  %s5173_s24 = inlined_call_operand.hbm [shape: bf16[32,64], index: 24, kind: input, shape index: {}]   ;;  %s5174_s25 = inlined_call_operand.vmem [shape: f32[1,64], index: 25, kind: input, shape index: {}]   ;;  %s5175_s26 = inlined_call_operand.vmem [shape: bf16[64,32], index: 26, kind: input, shape index: {}]   ;;  %s5176_s27 = inlined_call_operand.vmem [shape: f32[1,32], index: 27, kind: input, shape index: {}]   ;;  %s5177_s28 = inlined_call_operand.hbm [shape: f32[16,32], index: 28, kind: output, shape index: {}]  }
   0x1   :  { %5215 = sst [smem:[#allocation39_spill]] %s5149_s0 }
   0x2   :  { %5216 = sst [smem:[#allocation40_spill]] %s5150_s1 }
   0x3   :  { %5217 = sst [smem:[#allocation41_spill]] %s5151_s2 }
   0x4   :  { %5218 = sst [smem:[#allocation42_spill]] %s5152_s3 }
   0x5   :  { %5219 = sst [smem:[#allocation43_spill]] %s5153_s4 }
   0x6   :  { %5220 = sst [smem:[#allocation44_spill]] %s5154_s5 }
   0x7   :  { %5221 = sst [smem:[#allocation45_spill]] %s5155_s6 }
   0x8   :  { %5222 = sst [smem:[#allocation46_spill]] %s5156_s7 }
   0x9   :  { %5223 = sst [smem:[#allocation47_spill]] %s5157_s8 }
   0xa   :  { %5224 = sst [smem:[#allocation48_spill]] %s5158_s9 }
   0xb   :  { %5225 = sst [smem:[#allocation49_spill]] %s5159_s10 }
   0xc   :  { %5226 = sst [smem:[#allocation50_spill]] %s5160_s11 }
   0xd   :  { %5227 = sst [smem:[#allocation51_spill]] %s5161_s12 }
   0xe   :  { %5228 = sst [smem:[#allocation52_spill]] %s5163_s14 }
   0xf   :  { %5229 = sst [smem:[#allocation53_spill]] %s5166_s17 }
  0x10   :  { %5230 = sst [smem:[#allocation54_spill]] %s5168_s19 }
  0x11   :  { %5231 = sst [smem:[#allocation55_spill]] %s5170_s21 }
  0x12   :  { %5232 = sst [smem:[#allocation56_spill]] %s5171_s22 }
  0x13   :  { %5233 = sst [smem:[#allocation57_spill]] %s5172_s23 }
  0x14   :  { %5234 = sst [smem:[#allocation58_spill]] %s5174_s25 }
  0x15   :  { %5235 = sst [smem:[#allocation59_spill]] %s5175_s26 }
  0x16   :  { %5236 = sst [smem:[#allocation60_spill]] %s5176_s27 }
  0x17   :  { %5237 = sst [smem:[#allocation61_spill]] %s5177_s28 }
  0x18   :  { %33 = vsyncpa [#allocation3], 0 }
  0x19   :  { %35 = vsyncpa [#allocation3 + $0x1], 0 }
  0x1a   :  { %36 = vsyncpa [#allocation6], 0 }
  0x1b   :  { %37 = vsyncpa [#allocation9], 0 }
  0x1c   :  { %38 = vsyncpa [#allocation12], 0 }
  0x1d   :  { %39 = vsyncpa [#allocation15], 0 }
  0x1e   :  { %40 = vsyncpa [#allocation18], 0 }
  0x1f   :  { %41 = vsyncpa [#allocation21], 0 }
  0x20   :  { %42 = vsyncpa [#allocation24], 0 }
  0x21   :  { %43 = vsyncpa [#allocation27], 0 }
  0x22   :  { %44 = vsyncpa [#allocation4], 0 }
  0x23   :  { %46 = vsyncpa [#allocation4 + $0x1], 0  ;;  %s4338_s8 = smov 0   ;;  %s4340_s5 = smov 0  }
  0x24   :  { %s4342_s9 = smov 0   ;;  %s4344_s30 = smov 0  }
  0x25 LB: > { %s4166_s3 = smov [#allocation5]   ;;  %s4359_s10 = sadd.s32 4294967295, %s4164_s30   ;;  %s4164_s30 = sphi %s4344_s30, %s5300_s30   ;;  %s4160_s9 = sphi %s4342_s9, %s5299_s9   ;;  %s4156_s5 = sphi %s4340_s5, %s5298_s5   ;;  %s4152_s8 = sphi %s4338_s8, %s5297_s8  }
  0x26   : > { %s699_s6 = sshll.u32 %s4166_s3, 4  ;;  %p3002_p0 = scmp.ge.s32.totalorder %s4164_s30, 1  ;;  %s4364_s6 = int_to_ptr.vmem [resolvable:$true] %s699_s6 }
  0x27   : > { %p5192_p1 = scmp.eq.s32.totalorder %s4359_s10, 0  ;;  %p686_p2 = scmp.lt.s32.totalorder %s4164_s30, 3 }
  0x28   : > { %s4167_s11 = smov [#allocation8]   ;;  %s4168_s2 = smov [#allocation11]  }
  0x29   : > { %p4366_p3 = pnand %p3002_p0, %p686_p2  ;;  %s721_s29 = sshll.u32 %s4167_s11, 4  ;;  %s4373_s29 = int_to_ptr.vmem [resolvable:$true] %s721_s29 }
  0x2a   : > { %s745_s7 = sshll.u32 %s4168_s2, 4  ;;  %s4169_s1 = smov [#allocation14]   ;;  %s4381_s7 = int_to_ptr.vmem [resolvable:$true] %s745_s7 }
  0x2b   : > { %s5238_s0 = scalar_select %p4366_p3, 1, 0 }
  0x2c   : > { %p3415_p5 = pneg %p4366_p3  ;;  %s4383_s4 = sshll.u32 %s4169_s1, 4  ;;  %s770_s4 = int_to_ptr.vmem [resolvable:$true] %s4383_s4 }
  0x2d   : > { %s5240_s27 = sld [smem:[#allocation42_spill]] }
  0x2e   : > { %p4377_p6 = pnand %p3415_p5, %p5192_p1 }
  0x30   : > { %p4393_p8 = pneg %p4377_p6 }
  0x33   : > { %s3616_s25 = scalar_lea.hbm %s5240_s27, 128 }
  0x34   : > { %p3617_p7 = scmp.ne.s32.totalorder %s5240_s27, %s3616_s25  ;;  %p3623_p11 = scmp.lt.u32.totalorder %s3616_s25, %s5240_s27 }
  0x36   : > { %p3619_p9 = pnand %p4393_p8, %p3617_p7 }
  0x38   : > { %p3620_p10 = pneg %p3619_p9 }
  0x3a   : > { %p3625_p12 = pnand %p3623_p11, %p3620_p10 }
  0x3c   : > { %3628 = shalt.err (!%p3625_p12)
}
  0x3d   : > { %s3629_s23 = scalar_lea.vmem %s4364_s6, 128  ;;  %p3637_p5 = scmp.lt.s32.totalorder %s4364_s6, %s4364_s6 }
  0x3e   : > { %p3630_p13 = scmp.ne.s32.totalorder %s4364_s6, %s3629_s23  ;;  %p3638_p4 = scmp.lt.s32.totalorder %s3629_s23, %s3629_s23 }
  0x40   : > { %p3632_p0 = pnand %p3630_p13, %p4393_p8  ;;  %p3639_p7 = por %p3638_p4, %p3637_p5 }
  0x42   : > { %p3633_p2 = pneg %p3632_p0 }
  0x44   : > { %p3640_p9 = pnand %p3639_p7, %p3633_p2 }
  0x46   : > { %3643 = shalt.err (!%p3640_p9)
}
  0x47   : > { %3418 = dma.hbm_to_vmem [thread:$0]  (!%p4377_p6), %s5240_s27, 128, %s4364_s6, [#allocation6]  }
  0x48   : > { %s5242_s11 = sld [smem:[#allocation44_spill]] }
  0x4e   : > { %s3644_s1 = scalar_lea.hbm %s5242_s11, 16 }
  0x4f   : > { %p3645_p10 = scmp.ne.s32.totalorder %s5242_s11, %s3644_s1  ;;  %p3651_p12 = scmp.lt.u32.totalorder %s3644_s1, %s5242_s11 }
  0x51   : > { %p3647_p4 = pnand %p3645_p10, %p4393_p8 }
  0x53   : > { %p3648_p11 = pneg %p3647_p4 }
  0x55   : > { %p3653_p13 = pnand %p3651_p12, %p3648_p11 }
  0x57   : > { %3656 = shalt.err (!%p3653_p13)
}
  0x58   : > { %s3657_s6 = scalar_lea.vmem %s4373_s29, 16  ;;  %s3664_s21 = scalar_lea.vmem %s4373_s29, 32 }
  0x59   : > { %p3658_p0 = scmp.ne.s32.totalorder %s4373_s29, %s3657_s6  ;;  %p3665_p7 = scmp.lt.s32.totalorder %s4373_s29, %s4373_s29 }
  0x5a   : > { %p3666_p9 = scmp.lt.s32.totalorder %s3664_s21, %s3657_s6 }
  0x5b   : > { %p3660_p2 = pnand %p3658_p0, %p4393_p8 }
  0x5c   : > { %p3667_p10 = por %p3666_p9, %p3665_p7 }
  0x5d   : > { %p3661_p5 = pneg %p3660_p2 }
  0x5f   : > { %p3668_p4 = pnand %p3667_p10, %p3661_p5 }
  0x61   : > { %3671 = shalt.err (!%p3668_p4)
}
  0x62   : > { %3424 = dma.hbm_to_vmem [thread:$0]  (!%p4377_p6), %s5242_s11, 16, %s4373_s29, [#allocation9]  }
  0x63   : > { %s5243_s28 = sld [smem:[#allocation46_spill]] }
  0x69   : > { %s3672_s3 = scalar_lea.hbm %s5243_s28, 16 }
  0x6a   : > { %p3673_p11 = scmp.ne.s32.totalorder %s5243_s28, %s3672_s3  ;;  %p3679_p0 = scmp.lt.u32.totalorder %s3672_s3, %s5243_s28 }
  0x6c   : > { %p3675_p12 = pnand %p3673_p11, %p4393_p8 }
  0x6e   : > { %p3676_p13 = pneg %p3675_p12 }
  0x70   : > { %p3681_p2 = pnand %p3679_p0, %p3676_p13 }
  0x72   : > { %3684 = shalt.err (!%p3681_p2)
}
  0x73   : > { %s3685_s29 = scalar_lea.vmem %s4381_s7, 16  ;;  %s3692_s19 = scalar_lea.vmem %s4381_s7, 32 }
  0x74   : > { %p3686_p5 = scmp.ne.s32.totalorder %s4381_s7, %s3685_s29  ;;  %p3693_p10 = scmp.lt.s32.totalorder %s4381_s7, %s4381_s7 }
  0x75   : > { %p3694_p4 = scmp.lt.s32.totalorder %s3692_s19, %s3685_s29 }
  0x76   : > { %p3688_p7 = pnand %p3686_p5, %p4393_p8 }
  0x77   : > { %p3695_p11 = por %p3694_p4, %p3693_p10 }
  0x78   : > { %p3689_p9 = pneg %p3688_p7 }
  0x7a   : > { %p3696_p12 = pnand %p3695_p11, %p3689_p9 }
  0x7c   : > { %3699 = shalt.err (!%p3696_p12)
}
  0x7d   : > { %3430 = dma.hbm_to_vmem [thread:$0]  (!%p4377_p6), %s5243_s28, 16, %s4381_s7, [#allocation12]  }
  0x7e   : > { %s5244_s1 = sld [smem:[#allocation48_spill]] }
  0x84   : > { %s3700_s23 = scalar_lea.hbm %s5244_s1, 16 }
  0x85   : > { %p3701_p13 = scmp.ne.s32.totalorder %s5244_s1, %s3700_s23  ;;  %p3707_p5 = scmp.lt.u32.totalorder %s3700_s23, %s5244_s1 }
  0x87   : > { %p3703_p0 = pnand %p3701_p13, %p4393_p8 }
  0x89   : > { %p3704_p2 = pneg %p3703_p0 }
  0x8b   : > { %p3709_p7 = pnand %p3707_p5, %p3704_p2 }
  0x8d   : > { %3712 = shalt.err (!%p3709_p7)
}
  0x8e   : > { %s3713_s22 = scalar_lea.vmem %s770_s4, 16  ;;  %s3720_s7 = scalar_lea.vmem %s770_s4, 32 }
  0x8f   : > { %p3714_p9 = scmp.ne.s32.totalorder %s770_s4, %s3713_s22  ;;  %p3721_p11 = scmp.lt.s32.totalorder %s770_s4, %s770_s4 }
  0x90   : > { %p3722_p12 = scmp.lt.s32.totalorder %s3720_s7, %s3713_s22 }
  0x91   : > { %p3716_p10 = pnand %p3714_p9, %p4393_p8 }
  0x92   : > { %p3723_p1 = por %p3722_p12, %p3721_p11 }
  0x93   : > { %p3717_p4 = pneg %p3716_p10 }
  0x95   : > { %p3724_p3 = pnand %p3723_p1, %p3717_p4 }
  0x97   : > { %3727 = shalt.err (!%p3724_p3)
}
  0x98   : > { %3436 = dma.hbm_to_vmem [thread:$0]  (!%p4377_p6), %s5244_s1, 16, %s770_s4, [#allocation15]  }
  0x99   : > { %s4170_s3 = smov [#allocation17]   ;;  %s4171_s6 = smov [#allocation20]  }
  0x9a   : > { %s793_s23 = sshll.u32 %s4170_s3, 4  ;;  %s818_s21 = sshll.u32 %s4171_s6, 4  ;;  %s794_s23 = int_to_ptr.vmem [resolvable:$true] %s793_s23  ;;  %s4481_s21 = int_to_ptr.vmem [resolvable:$true] %s818_s21 }
  0x9b   : > { %s5245_s22 = sld [smem:[#allocation51_spill]] }
  0xa1   : > { %s3728_s7 = scalar_lea.hbm %s5245_s22, 256 }
  0xa2   : > { %p3729_p1 = scmp.ne.s32.totalorder %s5245_s22, %s3728_s7  ;;  %p3735_p0 = scmp.lt.u32.totalorder %s3728_s7, %s5245_s22 }
  0xa4   : > { %p3731_p3 = pnand %p3729_p1, %p4393_p8 }
  0xa6   : > { %p3732_p13 = pneg %p3731_p3 }
  0xa8   : > { %p3737_p2 = pnand %p3735_p0, %p3732_p13 }
  0xaa   : > { %3740 = shalt.err (!%p3737_p2)
}
  0xab   : > { %s3741_s26 = scalar_lea.vmem %s794_s23, 256  ;;  %p3749_p10 = scmp.lt.s32.totalorder %s794_s23, %s794_s23 }
  0xac   : > { %p3742_p5 = scmp.ne.s32.totalorder %s794_s23, %s3741_s26  ;;  %p3750_p4 = scmp.lt.s32.totalorder %s3741_s26, %s3741_s26 }
  0xae   : > { %p3744_p7 = pnand %p3742_p5, %p4393_p8  ;;  %p3751_p11 = por %p3750_p4, %p3749_p10 }
  0xb0   : > { %p3745_p9 = pneg %p3744_p7 }
  0xb2   : > { %p3752_p12 = pnand %p3751_p11, %p3745_p9 }
  0xb4   : > { %3755 = shalt.err (!%p3752_p12)
}
  0xb5   : > { %s5197_s27 = smov 64   ;;  %s5199_s11 = smov 4  }
  0xb6   : > { %3442 = dma.hbm_to_vmem [thread:$0]  (!%p4377_p6), %s5245_s22, 256, %s794_s23, [#allocation18], %s5197_s27, %s5197_s27, %s5199_s11  }
  0xb7   : > { %s5246_s14 = sld [smem:[#allocation52_spill]] }
  0xbd   : > { %s3756_s7 = scalar_lea.hbm %s5246_s14, 16 }
  0xbe   : > { %p3757_p1 = scmp.ne.s32.totalorder %s5246_s14, %s3756_s7  ;;  %p3763_p0 = scmp.lt.u32.totalorder %s3756_s7, %s5246_s14 }
  0xc0   : > { %p3759_p3 = pnand %p3757_p1, %p4393_p8 }
  0xc2   : > { %p3760_p13 = pneg %p3759_p3 }
  0xc4   : > { %p3765_p2 = pnand %p3763_p0, %p3760_p13 }
  0xc6   : > { %3768 = shalt.err (!%p3765_p2)
}
  0xc7   : > { %s3769_s23 = scalar_lea.vmem %s4481_s21, 16  ;;  %s3776_s3 = scalar_lea.vmem %s4481_s21, 32 }
  0xc8   : > { %p3770_p5 = scmp.ne.s32.totalorder %s4481_s21, %s3769_s23  ;;  %p3777_p10 = scmp.lt.s32.totalorder %s4481_s21, %s4481_s21 }
  0xc9   : > { %p3778_p4 = scmp.lt.s32.totalorder %s3776_s3, %s3769_s23 }
  0xca   : > { %p3772_p7 = pnand %p3770_p5, %p4393_p8 }
  0xcb   : > { %p3779_p11 = por %p3778_p4, %p3777_p10 }
  0xcc   : > { %p3773_p9 = pneg %p3772_p7 }
  0xce   : > { %p3780_p12 = pnand %p3779_p11, %p3773_p9 }
  0xd0   : > { %3783 = shalt.err (!%p3780_p12)
}
  0xd1   : > { %3448 = dma.hbm_to_vmem [thread:$0]  (!%p4377_p6), %s5246_s14, 16, %s4481_s21, [#allocation21]  }
  0xd2   : > { %s4174_s29 = smov [#allocation23]   ;;  %s4175_s7 = smov [#allocation7]  }
  0xd3   : > { %s843_s19 = sshll.u32 %s4174_s29, 4  ;;  %s710_s25 = sshll.u32 %s4175_s7, 4  ;;  %s844_s19 = int_to_ptr.vmem [resolvable:$true] %s843_s19  ;;  %s4528_s25 = int_to_ptr.vmem [resolvable:$true] %s710_s25 }
  0xd4   : > { %s5247_s17 = sld [smem:[#allocation53_spill]] }
  0xda   : > { %s3784_s23 = scalar_lea.hbm %s5247_s17, 16 }
  0xdb   : > { %p3785_p1 = scmp.ne.s32.totalorder %s5247_s17, %s3784_s23  ;;  %p3791_p0 = scmp.lt.u32.totalorder %s3784_s23, %s5247_s17 }
  0xdd   : > { %p3787_p3 = pnand %p3785_p1, %p4393_p8 }
  0xdf   : > { %p3788_p13 = pneg %p3787_p3 }
  0xe1   : > { %p3793_p2 = pnand %p3791_p0, %p3788_p13 }
  0xe3   : > { %3796 = shalt.err (!%p3793_p2)
}
  0xe4   : > { %s3797_s6 = scalar_lea.vmem %s844_s19, 16  ;;  %s3804_s29 = scalar_lea.vmem %s844_s19, 32 }
  0xe5   : > { %p3798_p5 = scmp.ne.s32.totalorder %s844_s19, %s3797_s6  ;;  %p3805_p10 = scmp.lt.s32.totalorder %s844_s19, %s844_s19 }
  0xe6   : > { %p3806_p4 = scmp.lt.s32.totalorder %s3804_s29, %s3797_s6 }
  0xe7   : > { %p3800_p7 = pnand %p3798_p5, %p4393_p8 }
  0xe8   : > { %p3807_p11 = por %p3806_p4, %p3805_p10 }
  0xe9   : > { %p3801_p9 = pneg %p3800_p7 }
  0xeb   : > { %p3808_p12 = pnand %p3807_p11, %p3801_p9 }
  0xed   : > { %3811 = shalt.err (!%p3808_p12)
}
  0xee   : > { %3454 = dma.hbm_to_vmem [thread:$0]  (!%p4377_p6), %s5247_s17, 16, %s844_s19, [#allocation24]  }
  0xef   : > { %s5248_s23 = sld [smem:[#allocation43_spill]] }
  0xf5   : > { %s3812_s3 = scalar_lea.hbm %s5248_s23, 16 }
  0xf6   : > { %p3813_p1 = scmp.ne.s32.totalorder %s5248_s23, %s3812_s3  ;;  %p3819_p0 = scmp.lt.u32.totalorder %s3812_s3, %s5248_s23 }
  0xf8   : > { %p3815_p3 = pnand %p3813_p1, %p4393_p8 }
  0xfa   : > { %p3816_p13 = pneg %p3815_p3 }
  0xfc   : > { %p3821_p2 = pnand %p3819_p0, %p3816_p13 }
  0xfe   : > { %3824 = shalt.err (!%p3821_p2)
}
  0xff   : > { %s3825_s19 = scalar_lea.vmem %s4528_s25, 16  ;;  %s3832_s27 = scalar_lea.vmem %s4528_s25, 32 }
 0x100   : > { %p3826_p5 = scmp.ne.s32.totalorder %s4528_s25, %s3825_s19  ;;  %p3833_p10 = scmp.lt.s32.totalorder %s4528_s25, %s4528_s25 }
 0x101   : > { %p3834_p4 = scmp.lt.s32.totalorder %s3832_s27, %s3825_s19 }
 0x102   : > { %p3828_p7 = pnand %p3826_p5, %p4393_p8 }
 0x103   : > { %p3835_p11 = por %p3834_p4, %p3833_p10 }
 0x104   : > { %p3829_p9 = pneg %p3828_p7 }
 0x106   : > { %p3836_p12 = pnand %p3835_p11, %p3829_p9 }
 0x108   : > { %3839 = shalt.err (!%p3836_p12)
}
 0x109   : > { %3421 = dma.hbm_to_vmem [thread:$0]  (!%p4377_p6), %s5248_s23, 16, %s4528_s25, [#allocation6]  }
 0x10a   : > { %s4176_s26 = smov [#allocation10]   ;;  %s4177_s1 = smov [#allocation13]  }
 0x10b   : > { %s731_s3 = sshll.u32 %s4176_s26, 4  ;;  %s755_s21 = sshll.u32 %s4177_s1, 4  ;;  %s732_s3 = int_to_ptr.vmem [resolvable:$true] %s731_s3  ;;  %s4572_s21 = int_to_ptr.vmem [resolvable:$true] %s755_s21 }
 0x10c   : > { %s5249_s19 = sld [smem:[#allocation45_spill]] }
 0x112   : > { %s3840_s27 = scalar_lea.hbm %s5249_s19, 256 }
 0x113   : > { %p3841_p1 = scmp.ne.s32.totalorder %s5249_s19, %s3840_s27  ;;  %p3847_p0 = scmp.lt.u32.totalorder %s3840_s27, %s5249_s19 }
 0x115   : > { %p3843_p3 = pnand %p3841_p1, %p4393_p8 }
 0x117   : > { %p3844_p13 = pneg %p3843_p3 }
 0x119   : > { %p3849_p2 = pnand %p3847_p0, %p3844_p13 }
 0x11b   : > { %3852 = shalt.err (!%p3849_p2)
}
 0x11c   : > { %s3853_s4 = scalar_lea.vmem %s732_s3, 256  ;;  %p3861_p10 = scmp.lt.s32.totalorder %s732_s3, %s732_s3 }
 0x11d   : > { %p3854_p5 = scmp.ne.s32.totalorder %s732_s3, %s3853_s4  ;;  %p3862_p4 = scmp.lt.s32.totalorder %s3853_s4, %s3853_s4 }
 0x11f   : > { %p3856_p7 = pnand %p3854_p5, %p4393_p8  ;;  %p3863_p11 = por %p3862_p4, %p3861_p10 }
 0x121   : > { %p3857_p9 = pneg %p3856_p7 }
 0x123   : > { %p3864_p12 = pnand %p3863_p11, %p3857_p9 }
 0x125   : > { %3867 = shalt.err (!%p3864_p12)
}
 0x126   : > { %s5250_s14 = smov 4   ;;  %s5251_s11 = smov 64  }
 0x127   : > { %3427 = dma.hbm_to_vmem [thread:$0]  (!%p4377_p6), %s5249_s19, 256, %s732_s3, [#allocation9], %s5251_s11, %s5251_s11, %s5250_s14  }
 0x128   : > { %s5252_s27 = sld [smem:[#allocation47_spill]] }
 0x12e   : > { %s3868_s7 = scalar_lea.hbm %s5252_s27, 256 }
 0x12f   : > { %p3869_p1 = scmp.ne.s32.totalorder %s5252_s27, %s3868_s7  ;;  %p3875_p0 = scmp.lt.u32.totalorder %s3868_s7, %s5252_s27 }
 0x131   : > { %p3871_p3 = pnand %p3869_p1, %p4393_p8 }
 0x133   : > { %p3872_p13 = pneg %p3871_p3 }
 0x135   : > { %p3877_p2 = pnand %p3875_p0, %p3872_p13 }
 0x137   : > { %3880 = shalt.err (!%p3877_p2)
}
 0x138   : > { %s3881_s3 = scalar_lea.vmem %s4572_s21, 256  ;;  %p3889_p10 = scmp.lt.s32.totalorder %s4572_s21, %s4572_s21 }
 0x139   : > { %p3882_p5 = scmp.ne.s32.totalorder %s4572_s21, %s3881_s3  ;;  %p3890_p4 = scmp.lt.s32.totalorder %s3881_s3, %s3881_s3 }
 0x13b   : > { %p3884_p7 = pnand %p3882_p5, %p4393_p8  ;;  %p3891_p11 = por %p3890_p4, %p3889_p10 }
 0x13d   : > { %p3885_p9 = pneg %p3884_p7 }
 0x13f   : > { %p3892_p12 = pnand %p3891_p11, %p3885_p9 }
 0x141   : > { %3895 = shalt.err (!%p3892_p12)
}
 0x142   : > { %3433 = dma.hbm_to_vmem [thread:$0]  (!%p4377_p6), %s5252_s27, 256, %s4572_s21, [#allocation12], %s5251_s11, %s5251_s11, %s5250_s14  }
 0x143   : > { %s4178_s26 = smov [#allocation16]   ;;  %s4179_s6 = smov [#allocation19]  }
 0x144   : > { %s783_s1 = sshll.u32 %s4178_s26, 4  ;;  %s807_s29 = sshll.u32 %s4179_s6, 4  ;;  %s784_s1 = int_to_ptr.vmem [resolvable:$true] %s783_s1  ;;  %s4621_s29 = int_to_ptr.vmem [resolvable:$true] %s807_s29 }
 0x145   : > { %s5253_s4 = sld [smem:[#allocation50_spill]] }
 0x14b   : > { %s3896_s3 = scalar_lea.hbm %s5253_s4, 16 }
 0x14c   : > { %p3897_p1 = scmp.ne.s32.totalorder %s5253_s4, %s3896_s3  ;;  %p3903_p0 = scmp.lt.u32.totalorder %s3896_s3, %s5253_s4 }
 0x14e   : > { %p3899_p3 = pnand %p3897_p1, %p4393_p8 }
 0x150   : > { %p3900_p13 = pneg %p3899_p3 }
 0x152   : > { %p3905_p2 = pnand %p3903_p0, %p3900_p13 }
 0x154   : > { %3908 = shalt.err (!%p3905_p2)
}
 0x155   : > { %s3909_s22 = scalar_lea.vmem %s784_s1, 16  ;;  %s3916_s26 = scalar_lea.vmem %s784_s1, 32 }
 0x156   : > { %p3910_p5 = scmp.ne.s32.totalorder %s784_s1, %s3909_s22  ;;  %p3917_p10 = scmp.lt.s32.totalorder %s784_s1, %s784_s1 }
 0x157   : > { %p3918_p4 = scmp.lt.s32.totalorder %s3916_s26, %s3909_s22 }
 0x158   : > { %p3912_p7 = pnand %p3910_p5, %p4393_p8 }
 0x159   : > { %p3919_p11 = por %p3918_p4, %p3917_p10 }
 0x15a   : > { %p3913_p9 = pneg %p3912_p7 }
 0x15c   : > { %p3920_p12 = pnand %p3919_p11, %p3913_p9 }
 0x15e   : > { %3923 = shalt.err (!%p3920_p12)
}
 0x15f   : > { %3439 = dma.hbm_to_vmem [thread:$0]  (!%p4377_p6), %s5253_s4, 16, %s784_s1, [#allocation15]  }
 0x160   : > { %s3924_s25 = scalar_lea.hbm %s5162_s13, 16 }
 0x161   : > { %p3925_p1 = scmp.ne.s32.totalorder %s5162_s13, %s3924_s25  ;;  %p3931_p0 = scmp.lt.u32.totalorder %s3924_s25, %s5162_s13 }
 0x163   : > { %p3927_p3 = pnand %p3925_p1, %p4393_p8 }
 0x165   : > { %p3928_p13 = pneg %p3927_p3 }
 0x167   : > { %p3933_p2 = pnand %p3931_p0, %p3928_p13 }
 0x169   : > { %3936 = shalt.err (!%p3933_p2)
}
 0x16a   : > { %s3937_s1 = scalar_lea.vmem %s4621_s29, 16  ;;  %s3944_s26 = scalar_lea.vmem %s4621_s29, 32 }
 0x16b   : > { %p3938_p5 = scmp.ne.s32.totalorder %s4621_s29, %s3937_s1  ;;  %p3945_p10 = scmp.lt.s32.totalorder %s4621_s29, %s4621_s29 }
 0x16c   : > { %p3946_p4 = scmp.lt.s32.totalorder %s3944_s26, %s3937_s1 }
 0x16d   : > { %p3940_p7 = pnand %p3938_p5, %p4393_p8 }
 0x16e   : > { %p3947_p11 = por %p3946_p4, %p3945_p10 }
 0x16f   : > { %p3941_p9 = pneg %p3940_p7 }
 0x171   : > { %p3948_p12 = pnand %p3947_p11, %p3941_p9 }
 0x173   : > { %3951 = shalt.err (!%p3948_p12)
}
 0x174   : > { %3445 = dma.hbm_to_vmem [thread:$0]  (!%p4377_p6), %s5162_s13, 16, %s4621_s29, [#allocation18]  }
 0x175   : > { %s4180_s6 = smov [#allocation22]   ;;  %s4181_s25 = smov [#allocation25]  }
 0x176   : > { %s829_s7 = sshll.u32 %s4180_s6, 4  ;;  %s859_s3 = sshll.u32 %s4181_s25, 4  ;;  %s830_s7 = int_to_ptr.vmem [resolvable:$true] %s829_s7  ;;  %s4665_s3 = int_to_ptr.vmem [resolvable:$true] %s859_s3 }
 0x177   : > { %s3952_s22 = scalar_lea.hbm %s5164_s15, 16 }
 0x178   : > { %p3953_p1 = scmp.ne.s32.totalorder %s5164_s15, %s3952_s22  ;;  %p3959_p0 = scmp.lt.u32.totalorder %s3952_s22, %s5164_s15 }
 0x17a   : > { %p3955_p3 = pnand %p3953_p1, %p4393_p8 }
 0x17c   : > { %p3956_p13 = pneg %p3955_p3 }
 0x17e   : > { %p3961_p2 = pnand %p3959_p0, %p3956_p13 }
 0x180   : > { %3964 = shalt.err (!%p3961_p2)
}
 0x181   : > { %s3965_s19 = scalar_lea.vmem %s830_s7, 16  ;;  %s3972_s6 = scalar_lea.vmem %s830_s7, 32 }
 0x182   : > { %p3966_p5 = scmp.ne.s32.totalorder %s830_s7, %s3965_s19  ;;  %p3973_p10 = scmp.lt.s32.totalorder %s830_s7, %s830_s7 }
 0x183   : > { %p3974_p4 = scmp.lt.s32.totalorder %s3972_s6, %s3965_s19 }
 0x184   : > { %p3968_p7 = pnand %p3966_p5, %p4393_p8 }
 0x185   : > { %p3975_p11 = por %p3974_p4, %p3973_p10 }
 0x186   : > { %p3969_p9 = pneg %p3968_p7 }
 0x188   : > { %p3976_p12 = pnand %p3975_p11, %p3969_p9 }
 0x18a   : > { %3979 = shalt.err (!%p3976_p12)
}
 0x18b   : > { %3451 = dma.hbm_to_vmem [thread:$0]  (!%p4377_p6), %s5164_s15, 16, %s830_s7, [#allocation21]  }
 0x18c   : > { %s3980_s1 = scalar_lea.hbm %s5169_s20, 256 }
 0x18d   : > { %p3981_p1 = scmp.ne.s32.totalorder %s5169_s20, %s3980_s1  ;;  %p3987_p0 = scmp.lt.u32.totalorder %s3980_s1, %s5169_s20 }
 0x18f   : > { %p3983_p3 = pnand %p3981_p1, %p4393_p8 }
 0x191   : > { %p3984_p13 = pneg %p3983_p3 }
 0x193   : > { %p3989_p2 = pnand %p3987_p0, %p3984_p13 }
 0x195   : > { %3992 = shalt.err (!%p3989_p2)
}
 0x196   : > { %s3993_s7 = scalar_lea.vmem %s4665_s3, 256  ;;  %p4001_p10 = scmp.lt.s32.totalorder %s4665_s3, %s4665_s3 }
 0x197   : > { %p3994_p5 = scmp.ne.s32.totalorder %s4665_s3, %s3993_s7  ;;  %p4002_p4 = scmp.lt.s32.totalorder %s3993_s7, %s3993_s7 }
 0x199   : > { %p3996_p7 = pnand %p3994_p5, %p4393_p8  ;;  %p4003_p11 = por %p4002_p4, %p4001_p10 }
 0x19b   : > { %p3997_p9 = pneg %p3996_p7 }
 0x19d   : > { %p4004_p12 = pnand %p4003_p11, %p3997_p9 }
 0x19f   : > { %4007 = shalt.err (!%p4004_p12)
}
 0x1a0   : > { %3457 = dma.hbm_to_vmem [thread:$0]  (!%p4377_p6), %s5169_s20, 256, %s4665_s3, [#allocation24], %s5251_s11, %s5251_s11, %s5250_s14  }
 0x1a1   : > { %s4182_s17 = smov [#allocation26]   ;;  %s4008_s26 = scalar_lea.hbm %s5173_s24, 256 }
 0x1a2   : > { %s881_s21 = sshll.u32 %s4182_s17, 4  ;;  %p4009_p1 = scmp.ne.s32.totalorder %s5173_s24, %s4008_s26  ;;  %s882_s21 = int_to_ptr.vmem [resolvable:$true] %s881_s21 }
 0x1a3   : > { %p4015_p0 = scmp.lt.u32.totalorder %s4008_s26, %s5173_s24 }
 0x1a4   : > { %p4011_p3 = pnand %p4009_p1, %p4393_p8 }
 0x1a6   : > { %p4012_p13 = pneg %p4011_p3 }
 0x1a8   : > { %p4017_p2 = pnand %p4015_p0, %p4012_p13 }
 0x1aa   : > { %4020 = shalt.err (!%p4017_p2)
}
 0x1ab   : > { %s4021_s3 = scalar_lea.vmem %s882_s21, 256  ;;  %p4029_p10 = scmp.lt.s32.totalorder %s882_s21, %s882_s21 }
 0x1ac   : > { %p4022_p5 = scmp.ne.s32.totalorder %s882_s21, %s4021_s3  ;;  %p4030_p4 = scmp.lt.s32.totalorder %s4021_s3, %s4021_s3 }
 0x1ae   : > { %p4024_p7 = pnand %p4022_p5, %p4393_p8  ;;  %p4031_p11 = por %p4030_p4, %p4029_p10 }
 0x1b0   : > { %p4025_p9 = pneg %p4024_p7 }
 0x1b2   : > { %p4032_p12 = pnand %p4031_p11, %p4025_p9 }
 0x1b4   : > { %4035 = shalt.err (!%p4032_p12)
}
 0x1b5   : > { %3460 = dma.hbm_to_vmem [thread:$0]  (!%p4377_p6), %s5173_s24, 256, %s882_s21, [#allocation27], %s5251_s11, %s5251_s11, %s5250_s14  }
 0x1b6   : > { %s3001_s12 = sadd.s32 4294967294, %s4164_s30   ;;  %s4734_s2 = sadd.s32 1, %s4164_s30  }
 0x1b7   : > { %s111_s17 = sadd.s32 1, %s4160_s9  ;;  %s108_s22 = ssub.s32 %s4164_s30, %s4734_s2 }
 0x1b8   : > { %p118_p8 = scmp.ne.s32.totalorder %s4160_s9, %s4156_s5  ;;  %p109_p1 = scmp.eq.s32.totalorder %s108_s22, 0 }
 0x1b9   : > { %p119_p3 = scmp.eq.s32.totalorder %s4164_s30, 0  ;;  %p124_p13 = scmp.ne.s32.totalorder %s4156_s5, %s4152_s8 }
 0x1ba   : > { %p673_p0 = scmp.eq.s32.totalorder %s4359_s10, 1  ;;  %p5254_p5 = scmp.eq.s32.totalorder %s4359_s10, 0 }
 0x1bb   : > { %s4746_s1 = scalar_select %p109_p1, %s4160_s9, %s111_s17  }
 0x1bc   : > { %p120_p2 = por %p119_p3, %p118_p8  ;;  %p4750_p7 = por %p5254_p5, %p124_p13 }
 0x1bd   : > { %p4754_p6 = por %p673_p0, %p118_p8  ;;  %p679_p9 = scmp.eq.s32.totalorder %s3001_s12, 1 }
 0x1be   : > { %p3484_p10 = scmp.lt.s32.totalorder %s4164_s30, 2  ;;  %s920_s11 = sand.u32 1, %s4160_s9  }
 0x1bf   : > { %s5256_s14 = scalar_select %p4754_p6, 1, 0 }
 0x1c0   : > { %p4760_p4 = por %p679_p9, %p124_p13  ;;  %s3019_s23 = sshll.u32 %s4164_s30, 4 }
 0x1c1   : > { %s5258_s7 = sld [smem:[#allocation41_spill]]  ;;  %s923_s6 = scalar_lea.vmem [#allocation2], %s920_s11 }
 0x1c2   : > { %s5257_s21 = scalar_select %p4760_p4, 1, 0 }
 0x1c3   : > { %s930_s25 = sshll.u32 %s923_s6, 4  ;;  %p4772_p11 = pnand %p3484_p10, %p120_p2  ;;  %s4770_s25 = int_to_ptr.vmem [resolvable:$true] %s930_s25 }
 0x1c4   : > { %s921_s17 = scalar_lea.sflag [#allocation3], %s920_s11 }
 0x1c5   : > { %p4038_p8 = pneg %p4772_p11 }
 0x1c7   : > { %s4768_s3 = scalar_lea.hbm %s5258_s7, %s3019_s23  ;;  %s4041_s19 = scalar_lea.hbm %s5258_s7, 32 }
 0x1c8   : > { %s4036_s22 = scalar_lea.hbm %s4768_s3, 16  ;;  %p4042_p13 = scmp.lt.u32.totalorder %s4768_s3, %s5258_s7 }
 0x1c9   : > { %p4037_p12 = scmp.ne.s32.totalorder %s4768_s3, %s4036_s22  ;;  %p4043_p0 = scmp.lt.u32.totalorder %s4041_s19, %s4036_s22 }
 0x1ca   : > { %p4045_p5 = scmp.lt.u32.totalorder %s4036_s22, %s4768_s3 }
 0x1cb   : > { %p4039_p1 = pnand %p4038_p8, %p4037_p12  ;;  %p4044_p2 = por %p4043_p0, %p4042_p13 }
 0x1cd   : > { %p4040_p3 = pneg %p4039_p1  ;;  %p4046_p9 = por %p4045_p5, %p4044_p2 }
 0x1cf   : > { %p4047_p10 = pnand %p4046_p9, %p4040_p3 }
 0x1d1   : > { %4050 = shalt.err (!%p4047_p10)
}
 0x1d2   : > { %s4051_s11 = scalar_lea.vmem %s4770_s25, 16  ;;  %s4183_s23 = smov [#allocation2]  }
 0x1d3   : > { %p4052_p12 = scmp.ne.s32.totalorder %s4770_s25, %s4051_s11  ;;  %s4056_s29 = sshll.u32 %s4183_s23, 4  ;;  %s4057_s29 = int_to_ptr.vmem [resolvable:$false] %s4056_s29 }
 0x1d4   : > { %s4058_s4 = scalar_lea.vmem %s4057_s29, 32  ;;  %p4059_p6 = scmp.lt.s32.totalorder %s4770_s25, %s4057_s29 }
 0x1d5   : > { %p4054_p1 = pnand %p4052_p12, %p4038_p8  ;;  %p4060_p13 = scmp.lt.s32.totalorder %s4058_s4, %s4051_s11 }
 0x1d7   : > { %p4055_p4 = pneg %p4054_p1  ;;  %p4061_p0 = por %p4060_p13, %p4059_p6 }
 0x1d9   : > { %p4062_p2 = pnand %p4061_p0, %p4055_p4 }
 0x1db   : > { %4065 = shalt.err (!%p4062_p2)
}
 0x1dc   : > { %3464 = dma.hbm_to_vmem [thread:$0]  (!%p4772_p11), %s4768_s3, 16, %s4770_s25, %s921_s17  }
 0x1dd   : > { %p5260_p3 = scmp.ne.s32.totalorder %s5238_s0, 0 }
 0x1de   : > { %s4804_s22 = sand.u32 (!%p5260_p3), 1, %s4156_s5  }
 0x1df   : > { %939 = sbr.rel (%p5260_p3) target bundleno = 4526 (0x11ae), region = 132  ;;  %s942_s19 = scalar_lea.sflag (!%p5260_p3), [#allocation3], %s4804_s22 }
 0x1e6   : > { %4111 = dma.done.wait (%p4750_p7), %s942_s19, 16  }
 0x1e7   : > { %4113 = vsyncadd (%p4750_p7), %s942_s19, 4294967280  ;;  %p5261_p6 = scmp.eq.s32.totalorder %s4359_s10, 0 }
 0x1e9   : > { %4115 = dma.done.wait (%p5261_p6), [#allocation6], 144   ;;  %p5262_p4 = pmov %p5261_p6 }
 0x1eb   : > { %4117 = vsyncadd (%p5262_p4), [#allocation6], 4294967152  ;;  %p5263_p11 = pmov %p5262_p4 }
 0x1ec   : > { %p5264_p8 = pmov %p5262_p4 }
 0x1ed   : > { %4119 = dma.done.wait (%p5263_p11), [#allocation9], 272  }
 0x1ee   : > { %4121 = vsyncadd (%p5264_p8), [#allocation9], 4294967024  ;;  %p5265_p5 = pmov %p5262_p4 }
 0x1ef   : > { %p5266_p9 = pmov %p5262_p4 }
 0x1f0   : > { %4123 = dma.done.wait (%p5265_p5), [#allocation12], 272  }
 0x1f1   : > { %4125 = vsyncadd (%p5266_p9), [#allocation12], 4294967024  ;;  %p5267_p7 = pmov %p5262_p4 }
 0x1f2   : > { %p5268_p10 = pmov %p5262_p4 }
 0x1f3   : > { %4127 = dma.done.wait (%p5267_p7), [#allocation15], 32  }
 0x1f4   : > { %4129 = vsyncadd (%p5268_p10), [#allocation15], 4294967264  ;;  %p5269_p12 = pmov %p5262_p4 }
 0x1f5   : > { %p5270_p1 = pmov %p5262_p4 }
 0x1f6   : > { %4131 = dma.done.wait (%p5269_p12), [#allocation18], 272  }
 0x1f7   : > { %4133 = vsyncadd (%p5270_p1), [#allocation18], 4294967024  ;;  %p5271_p13 = pmov %p5270_p1 }
 0x1f8   : > { %p5272_p0 = pmov %p5270_p1 }
 0x1f9   : > { %4135 = dma.done.wait (%p5271_p13), [#allocation21], 32  }
 0x1fa   : > { %4137 = vsyncadd (%p5272_p0), [#allocation21], 4294967264  ;;  %p5273_p2 = pmov %p5272_p0 }
 0x1fb   : > { %p5274_p3 = pmov %p5272_p0 }
 0x1fc   : > { %4139 = dma.done.wait (%p5273_p2), [#allocation24], 272  }
 0x1fd   : > { %4141 = vsyncadd (%p5274_p3), [#allocation24], 4294967024  ;;  %p5275_p6 = pmov %p5272_p0 }
 0x1fe   : > { %p5276_p4 = pmov %p5272_p0 }
 0x1ff   : > { %4143 = dma.done.wait (%p5275_p6), [#allocation27], 256  }
 0x200   : > { %4145 = vsyncadd (%p5276_p4), [#allocation27], 4294967040  ;;  %p1085_p11 = scmp.lt.s32.totalorder %s4359_s10, 1  ;;  %s5277_s12 = sld [smem:[#allocation39_spill]]  ;;  %vm1101_vm0 = vcmask 261120   ;;  %v3558_v7 = vld [vmem:[#allocation10] sm:$0xff]  }
 0x201   : > { %v3559_v8 = vld [vmem:[#allocation13] sm:$0xff]   ;;  %v4184_v9 = vmov 0.0   ;;  %v3560_v10 = vld [vmem:[#allocation10 + $0x8] sm:$0xff]   ;;  %v3561_v11 = vld [vmem:[#allocation13 + $0x8] sm:$0xff]   ;;  %vm4185_vm1 = vmmov 0   ;;  %s5278_s29 = sld [smem:[#allocation49_spill]] }
 0x202   : > { %s1086_s0 = scalar_select %p1085_p11, %s4359_s10, 1  ;;  %3171 = vmatprep.subr.bf16.mxu0 %v4184_v9  ;;  %3179 = vmatprep.subr.bf16.mxu1 %v4184_v9  ;;  %v3040_v16 = vld [vmem:[#allocation7] ss:$0 sm:$0xff]  ;;  %v3041_v18 = vld [vmem:[#allocation8] ss:$0 sm:$0xff]  ;;  %vm1332_vm2 = vcmask 64512  }
 0x203   : > { %3172 = vmatpush3.bf16.msra.mxu0 %v3558_v7  ;;  %3180 = vmatpush3.bf16.msra.mxu1 %v3559_v8  ;;  %v3046_v24 = vld [vmem:[#allocation14] ss:$0 sm:$0xff]  ;;  %v3042_v25 = vld [vmem:[#allocation11] ss:$0 sm:$0xff]  ;;  %v3050_v38 = vld [vmem:[#allocation16] ss:$0 sm:$0xff] }
 0x204   : > { %s3037_s26 = sshll.u32 %s1086_s0, 3  ;;  %3173 = vmatprep.subr.bf16.mxu0 %v4184_v9  ;;  %3181 = vmatprep.subr.bf16.mxu1 %v4184_v9  ;;  %s5211_s0 = smov 112   ;;  %vm1394_vm3 = vcmask 1043456   ;;  %v1130_v56 = vld [vmem:[#allocation5] sm:$0xff]  ;;  %vm1784_vm4 = vcmask 130048   ;;  %vm1786_vm5 = vcmask 195584  }
 0x205   : > { %3175 = vmatprep.mubr.msk.bf16.mxu0 %vm4185_vm1, %v4184_v9  ;;  %3183 = vmatprep.mubr.msk.bf16.mxu1 %vm4185_vm1, %v4184_v9  ;;  %s5209_s3 = smov 104   ;;  %s5208_s25 = smov 8   ;;  %vm2708_vm6 = vcmask 523264  }
 0x206   : > { %s1088_s17 = scalar_lea.vmem %s5277_s12, %s3037_s26  ;;  %s4187_s26 = smov 120  }
 0x207   : > { %v4849_v0 = vld [vmem:[%s1088_s17] sm:$0xff]  ;;  %3174 = vmatpush3.bf16.msra.mxu0 %v3560_v10  ;;  %3182 = vmatpush3.bf16.msra.mxu1 %v3561_v11  ;;  %v3563_v23 = vld [vmem:[%s5278_s29 + $0x8] sm:$0xff]   ;;  %s5207_s12 = smov 16   ;;  %s5206_s17 = smov 24  }
 0x208   : > { %v1102_v1 = vsel %vm1101_vm0, %v4849_v0, 0.0  ;;  %3187 = vmatprep.subr.bf16.mxu0 %v4184_v9  ;;  %3195 = vmatprep.subr.bf16.mxu1 %v4184_v9  ;;  %v3562_v21 = vld [vmem:[%s5278_s29] sm:$0xff]   ;;  %s3038_s11 = sshll.u32 %s4359_s10, 1  ;;  %s5283_s19 = scalar_lea.vmem [#allocation2], %s4804_s22 }
 0x209   : > { %1103 = vadd.xlane.f32.xlu0 %v1102_v1  ;;  %p1090_p8 = scmp.lt.s32.totalorder %s3038_s11, 3  ;;  %s5285_s6 = sld [smem:[#allocation56_spill]] }
 0x20a   : > { %s3104_s23 = sshll.u32 %s4359_s10, 7  ;;  %s2754_s10 = scalar_lea.sflag [#allocation4], %s4804_s22 }
 0x20b   : > { %s5302_s11 = smov (!%p1090_p8, %s3038_s11), 3  ;;  %p5294_p9 = scmp.ne.s32.totalorder %s5256_s14, 0 }
 0x296   : > { %v1104_v2 = vpop.xlane.xlu0 %1103 }
 0x297   : > { %v1106_v3 = vmul.f32 0.03125, %v1104_v2 }
 0x299   : > { %v1107_v4 = vsub.f32 %v4849_v0, %v1106_v3 }
 0x29b   : > { %v1108_v5 = vmul.f32 %v1107_v4, %v1107_v4 }
 0x29d   : > { %v1109_v6 = vsel %vm1101_vm0, %v1108_v5, 0.0 }
 0x29e   : > { %1110 = vadd.xlane.f32.xlu0 %v1109_v6 }
 0x32b   : > { %v1111_v12 = vpop.xlane.xlu0 %1110 }
 0x32c   : > { %v1112_v13 = vmul.f32 0.03125, %v1111_v12 }
 0x32e   : > { %v1113_v14 = vadd.f32 1e-05, %v1112_v13 }
 0x330   : > { %3580 = vrsqrt.f32 %v1113_v14 }
 0x33a   : > { %v3581_v15 = vpop.eup %3580 }
 0x33b   : > { %v1115_v17 = vmul.f32 %v3581_v15, %v1107_v4 }
 0x33d   : > { %v1122_v19 = vmul.f32 %v3040_v16, %v1115_v17 }
 0x33f   : > { %v1129_v20 = vadd.f32 %v3041_v18, %v1122_v19 }
 0x341   : > { %v1151_v22 = vpack.c.bf16 %v1129_v20, %v1129_v20 }
 0x343   : > { %3176 = vmatmul.mubr.msk.bf16.vlgmr.msra.gmra.mrb[0].mxu0 %vm1101_vm0, %v1151_v22  ;;  %3184 = vmatmul.mubr.msk.bf16.vlgmr.msra.gmra.mrb[0].mxu1 %vm1101_vm0, %v1151_v22 }
 0x344   : > { %3188 = vmatpush3.bf16.msra.mxu0 %v3562_v21  ;;  %3191 = vmatprep.mubr.msk.bf16.mxu0 %vm4185_vm1, %v4184_v9 }
 0x345   : > { %3189 = vmatprep.subr.bf16.mxu0 %v4184_v9  ;;  %3197 = vmatprep.mubr.msk.bf16.mxu1 %vm4185_vm1, %v4184_v9 }
 0x348   : > { %3190 = vmatpush3.bf16.msra.mxu0 %v3563_v23 }
 0x349   : > { %3201 = vmatprep.subr.bf16.mxu0 %v4184_v9 }
 0x34b   : > { %3192 = vmatmul.mubr.msk.bf16.vlgmr.msra.gmra.mrb[4].mxu0 %vm1101_vm0, %v1151_v22 }
 0x34c   : > { %3203 = vmatprep.mubr.msk.bf16.mxu0 %vm4185_vm1, %v4184_v9 }
 0x416   : > { %v1207_v26 = vpop.f32.mrb[0].mxu0  ;;  %v1265_v27 = vpop.f32.mrb[0].mxu1 }
 0x417   : > { %v1266_v28 = vadd.f32 %v3046_v24, %v1265_v27  ;;  %v3177_v29 = vpop.f32.mrb[1].mxu0  ;;  %v3185_v30 = vpop.f32.mrb[1].mxu1  ;;  %v1208_v33 = vadd.f32 %v3042_v25, %v1207_v26 }
 0x418   : > { %v1210_v31 = vpop.f32.mrb[2].mxu0  ;;  %v1268_v32 = vpop.f32.mrb[2].mxu1 }
 0x419   : > { %v1330_v34 = vpack.c.bf16 %v1266_v28, %v1266_v28  ;;  %v3178_v35 = vpop.f32.mrb[3].mxu0  ;;  %v3186_v36 = vpop.f32.mrb[3].mxu1  ;;  %v1329_v39 = vpack.c.bf16 %v1208_v33, %v1208_v33 }
 0x41b   : > { %1553 = vrot.lane.b32.xlu0 %v1330_v34, %s5211_s0  ;;  %1442 = vrot.lane.b32.xlu1 %v1330_v34, %s4187_s26  ;;  %v1337_v37 = vsel %vm1332_vm2, %v1330_v34, 0 }
 0x41c   : > { %3196 = vmatpush3.bf16.xpose.msra.mxu1 %v1337_v37 }
 0x41d   : > { %3207 = vmatprep.subr.bf16.mxu1 %v4184_v9 }
 0x41e   : > { %v1323_v40 = vpop.f32.mrb[4].mxu0 }
 0x41f   : > { %v1324_v41 = vadd.f32 %v3050_v38, %v1323_v40  ;;  %1439 = vrot.lane.b32.xlu1 %v1329_v39, %s4187_s26  ;;  %v3193_v42 = vpop.f32.mrb[5].mxu0 }
 0x420   : > { %v1326_v43 = vpop.f32.mrb[6].mxu0 }
 0x421   : > { %v4887_v44 = vpack.c.bf16 %v1324_v41, %v1324_v41  ;;  %v3194_v45 = vpop.f32.mrb[7].mxu0 }
 0x423   : > { %1551 = vrot.lane.b32.xlu1 %v1329_v39, %s5211_s0  ;;  %3198 = vmatmul.mubr.msk.bf16.vlgmr.msra.gmra.mrb[4].mxu1 %vm1332_vm2, %v1329_v39  ;;  %v1396_v46 = vsel %vm1394_vm3, %v4887_v44, 0 }
 0x424   : > { %3202 = vmatpush3.bf16.msra.mxu0 %v1396_v46  ;;  %3209 = vmatprep.mubr.msk.bf16.mxu1 %vm4185_vm1, %v4184_v9 }
 0x425   : > { %3213 = vmatprep.subr.bf16.mxu0 %v4184_v9 }
 0x427   : > { %1663 = vrot.lane.b32.xlu1 %v1330_v34, %s5209_s3 }
 0x42b   : > { %1661 = vrot.lane.b32.xlu1 %v1329_v39, %s5209_s3 }
 0x48d   : > { %v1443_v47 = vpop.permute.xlu1 %1442  ;;  %v1554_v50 = vpop.permute.xlu0 %1553 }
 0x48e   : > { %v1448_v48 = vsel %vm1332_vm2, %v1443_v47, 0  ;;  %v1559_v52 = vsel %vm1332_vm2, %v1554_v50, 0 }
 0x48f   : > { %3208 = vmatpush3.bf16.xpose.msra.mxu1 %v1448_v48 }
 0x490   : > { %3219 = vmatprep.subr.bf16.mxu1 %v4184_v9 }
 0x491   : > { %v1440_v49 = vpop.permute.xlu1 %1439 }
 0x495   : > { %v1552_v51 = vpop.permute.xlu1 %1551 }
 0x496   : > { %3210 = vmatmul.mubr.msk.bf16.vlgmr.msra.gmra.mrb[8].mxu1 %vm1332_vm2, %v1440_v49 }
 0x497   : > { %3220 = vmatpush3.bf16.xpose.msra.mxu1 %v1559_v52  ;;  %3221 = vmatprep.mubr.msk.bf16.mxu1 %vm4185_vm1, %v4184_v9 }
 0x498   : > { %3231 = vmatprep.subr.bf16.mxu1 %v4184_v9 }
 0x499   : > { %v1664_v53 = vpop.permute.xlu1 %1663 }
 0x49a   : > { %v1669_v54 = vsel %vm1332_vm2, %v1664_v53, 0 }
 0x49d   : > { %v1662_v55 = vpop.permute.xlu1 %1661 }
 0x49e   : > { %3222 = vmatmul.mubr.msk.bf16.vlgmr.msra.gmra.mrb[12].mxu1 %vm1332_vm2, %v1552_v51 }
 0x49f   : > { %3232 = vmatpush3.bf16.xpose.msra.mxu1 %v1669_v54  ;;  %3233 = vmatprep.mubr.msk.bf16.mxu1 %vm4185_vm1, %v4184_v9 }
 0x4a0   : > { %3243 = vmatprep.subr.bf16.mxu1 %v4184_v9 }
 0x4a6   : > { %3234 = vmatmul.mubr.msk.bf16.vlgmr.msra.gmra.mrb[16].mxu1 %vm1332_vm2, %v1662_v55 }
 0x4a7   : > { %3247 = vmatprep.mubr.msk.bf16.mxu1 %vm4185_vm1, %v4184_v9 }
 0x4f6   : > { %v1373_v57 = vpop.f32.mrb[4].mxu1 }
 0x4f7   : > { %v1374_v58 = vadd.f32 %v1373_v57, %v1130_v56  ;;  %v3199_v59 = vpop.f32.mrb[5].mxu1 }
 0x4f8   : > { %v1376_v60 = vpop.f32.mrb[6].mxu1 }
 0x4f9   : > { %v3200_v61 = vpop.f32.mrb[7].mxu1  ;;  %v1379_v62 = vsel %vm1332_vm2, %v1374_v58, -inf }
 0x4fa   : > { %1380 = vmax.xlane.f32.xlu1 %v1379_v62 }
 0x569   : > { %v1484_v63 = vpop.f32.mrb[8].mxu1 }
 0x56a   : > { %v1485_v1 = vadd.f32 %v1484_v63, %v1130_v56  ;;  %v3211_v2 = vpop.f32.mrb[9].mxu1 }
 0x56b   : > { %v1487_v3 = vpop.f32.mrb[10].mxu1  ;;  %v3564_v2 = vld [vmem:[#allocation17] sm:$0xff]  }
 0x56c   : > { %v3212_v4 = vpop.f32.mrb[11].mxu1  ;;  %v1490_v5 = vsel %vm1332_vm2, %v1485_v1, -inf  ;;  %3244 = vmatpush3.bf16.msra.mxu1 %v3564_v2 }
 0x56d   : > { %1491 = vmax.xlane.f32.xlu0 %v1490_v5  ;;  %3245 = vmatprep.subr.bf16.mxu1 %v4184_v9 }
 0x571   : > { %v1595_v6 = vpop.f32.mrb[12].mxu1 }
 0x572   : > { %v1596_v7 = vadd.f32 %v1595_v6, %v1130_v56  ;;  %v3223_v8 = vpop.f32.mrb[13].mxu1 }
 0x573   : > { %v1598_v10 = vpop.f32.mrb[14].mxu1 }
 0x574   : > { %v3224_v11 = vpop.f32.mrb[15].mxu1  ;;  %v1601_v12 = vsel %vm1332_vm2, %v1596_v7, -inf }
 0x575   : > { %1602 = vmax.xlane.f32.xlu1 %v1601_v12  ;;  %v3565_v12 = vld [vmem:[#allocation17 + $0x8] sm:$0xff]  }
 0x576   : > { %3246 = vmatpush3.bf16.msra.mxu1 %v3565_v12 }
 0x577   : > { %3259 = vmatprep.subr.bf16.mxu1 %v4184_v9 }
 0x579   : > { %v1705_v13 = vpop.f32.mrb[16].mxu1 }
 0x57a   : > { %v1706_v14 = vadd.f32 %v1705_v13, %v1130_v56  ;;  %v3235_v15 = vpop.f32.mrb[17].mxu1 }
 0x57b   : > { %v1708_v16 = vpop.f32.mrb[18].mxu1 }
 0x57c   : > { %v3236_v17 = vpop.f32.mrb[19].mxu1  ;;  %v1711_v18 = vsel %vm1332_vm2, %v1706_v14, -inf }
 0x57d   : > { %1712 = vmax.xlane.f32.xlu1 %v1711_v18 }
 0x587   : > { %v1381_v19 = vpop.xlane.xlu1 %1380 }
 0x588   : > { %v1382_v20 = vsub.f32 %v1374_v58, %v1381_v19 }
 0x58a   : > { %v1383_v21 = vmul.f32 1.442695, %v1382_v20 }
 0x58c   : > { %3582 = vpow2.f32 %v1383_v21 }
 0x596   : > { %v3583_v22 = vpop.eup %3582 }
 0x597   : > { %v1385_v23 = vsel %vm1332_vm2, %v3583_v22, 0.0 }
 0x598   : > { %1386 = vadd.xlane.f32.xlu0 %v1385_v23 }
 0x5fa   : > { %v1492_v24 = vpop.xlane.xlu0 %1491 }
 0x5fb   : > { %v1493_v25 = vsub.f32 %v1485_v1, %v1492_v24  ;;  %v3062_v24 = vld [vmem:[#allocation19] ss:$0 sm:$0xff] }
 0x5fd   : > { %v1494_v26 = vmul.f32 1.442695, %v1493_v25 }
 0x5ff   : > { %3584 = vpow2.f32 %v1494_v26 }
 0x602   : > { %v1603_v27 = vpop.xlane.xlu1 %1602 }
 0x603   : > { %v1604_v28 = vsub.f32 %v1596_v7, %v1603_v27 }
 0x605   : > { %v1605_v29 = vmul.f32 1.442695, %v1604_v28 }
 0x607   : > { %3586 = vpow2.f32 %v1605_v29 }
 0x609   : > { %v3585_v30 = vpop.eup %3584 }
 0x60a   : > { %v1496_v31 = vsel %vm1332_vm2, %v3585_v30, 0.0  ;;  %v1713_v35 = vpop.xlane.xlu1 %1712 }
 0x60b   : > { %1497 = vadd.xlane.f32.xlu1 %v1496_v31  ;;  %v1714_v36 = vsub.f32 %v1706_v14, %v1713_v35 }
 0x60d   : > { %v1715_v37 = vmul.f32 1.442695, %v1714_v36 }
 0x611   : > { %v3587_v32 = vpop.eup %3586 }
 0x612   : > { %v1607_v33 = vsel %vm1332_vm2, %v3587_v32, 0.0 }
 0x613   : > { %1608 = vadd.xlane.f32.xlu0 %v1607_v33 }
 0x61c   : > { %1613 = vrot.lane.b32.xlu1 %v4887_v44, %s5211_s0 }
 0x625   : > { %v1387_v34 = vpop.xlane.xlu0 %1386 }
 0x626   : > { %3588 = vrcp.f32 %v1387_v34 }
 0x627   : > { %3590 = vpow2.f32 %v1715_v37  ;;  %v3566_v37 = vld [vmem:[%s5167_s18] sm:$0xff]  }
 0x629   : > { %1503 = vrot.lane.b32.xlu0 %v4887_v44, %s4187_s26 }
 0x630   : > { %v3589_v38 = vpop.eup %3588 }
 0x631   : > { %v1389_v39 = vmul.f32 %v3589_v38, %v3583_v22  ;;  %v3591_v41 = vpop.eup %3590 }
 0x632   : > { %v1717_v42 = vsel %vm1332_vm2, %v3591_v41, 0.0 }
 0x633   : > { %v1390_v40 = vpack.c.bf16 %v1389_v39, %v1389_v39 }
 0x635   : > { %3204 = vmatmul.mubr.msk.bf16.vlgmr.msra.gmra.mrb[8].mxu0 %vm1332_vm2, %v1390_v40 }
 0x636   : > { %3215 = vmatprep.mubr.msk.bf16.mxu0 %vm4185_vm1, %v4184_v9 }
 0x640   : > { %1718 = vadd.xlane.f32.xlu1 %v1717_v42  ;;  %v3569_v42 = vld [vmem:[%s5165_s16 + $0x8] sm:$0xff]  }
 0x651   : > { %1723 = vrot.lane.b32.xlu1 %v4887_v44, %s5209_s3  ;;  %s5279_s3 = sld [smem:[#allocation40_spill]] }
 0x698   : > { %v1498_v43 = vpop.xlane.xlu1 %1497 }
 0x699   : > { %3592 = vrcp.f32 %v1498_v43 }
 0x69c   : > { %v1614_v50 = vpop.permute.xlu1 %1613 }
 0x69d   : > { %v1619_v52 = vsel %vm1394_vm3, %v1614_v50, 0  ;;  %v3067_v50 = vld [vmem:[#allocation22] ss:$0 sm:$0xff] }
 0x6a0   : > { %v1609_v45 = vpop.xlane.xlu0 %1608 }
 0x6a1   : > { %3594 = vrcp.f32 %v1609_v45 }
 0x6a3   : > { %v3593_v46 = vpop.eup %3592 }
 0x6a4   : > { %v1500_v47 = vmul.f32 %v3593_v46, %v3585_v30  ;;  %v1504_v48 = vpop.permute.xlu0 %1503 }
 0x6a5   : > { %v1509_v49 = vsel %vm1394_vm3, %v1504_v48, 0  ;;  %v3066_v48 = vld [vmem:[#allocation20] ss:$0 sm:$0xff] }
 0x6a6   : > { %3214 = vmatpush3.bf16.msra.mxu0 %v1509_v49  ;;  %v1501_v51 = vpack.c.bf16 %v1500_v47, %v1500_v47 }
 0x6a7   : > { %3225 = vmatprep.subr.bf16.mxu0 %v4184_v9 }
 0x6a9   : > { %3216 = vmatmul.mubr.msk.bf16.vlgmr.msra.gmra.mrb[12].mxu0 %vm1332_vm2, %v1501_v51 }
 0x6aa   : > { %3226 = vmatpush3.bf16.msra.mxu0 %v1619_v52  ;;  %3227 = vmatprep.mubr.msk.bf16.mxu0 %vm4185_vm1, %v4184_v9 }
 0x6ab   : > { %v3595_v44 = vpop.eup %3594  ;;  %3237 = vmatprep.subr.bf16.mxu0 %v4184_v9 }
 0x6ac   : > { %v1611_v53 = vmul.f32 %v3595_v44, %v3587_v32 }
 0x6ae   : > { %v1612_v54 = vpack.c.bf16 %v1611_v53, %v1611_v53 }
 0x6b1   : > { %3228 = vmatmul.mubr.msk.bf16.vlgmr.msra.gmra.mrb[16].mxu0 %vm1332_vm2, %v1612_v54 }
 0x6b2   : > { %3239 = vmatprep.mubr.msk.bf16.mxu0 %vm4185_vm1, %v4184_v9 }
 0x6cd   : > { %v1719_v55 = vpop.xlane.xlu1 %1718 }
 0x6ce   : > { %3596 = vrcp.f32 %v1719_v55 }
 0x6d1   : > { %v1724_v56 = vpop.permute.xlu1 %1723 }
 0x6d2   : > { %v1729_v57 = vsel %vm1394_vm3, %v1724_v56, 0 }
 0x6d3   : > { %3238 = vmatpush3.bf16.msra.mxu0 %v1729_v57 }
 0x6d4   : > { %3251 = vmatprep.subr.bf16.mxu0 %v4184_v9 }
 0x6d8   : > { %v3597_v58 = vpop.eup %3596 }
 0x6d9   : > { %v1721_v59 = vmul.f32 %v3597_v58, %v3591_v41  ;;  %v3568_v41 = vld [vmem:[%s5165_s16] sm:$0xff]  }
 0x6db   : > { %v1722_v60 = vpack.c.bf16 %v1721_v59, %v1721_v59 }
 0x6dd   : > { %3240 = vmatmul.mubr.msk.bf16.vlgmr.msra.gmra.mrb[20].mxu0 %vm1332_vm2, %v1722_v60 }
 0x6de   : > { %3255 = vmatprep.mubr.msk.bf16.mxu0 %vm4185_vm1, %v4184_v9  ;;  %3252 = vmatpush3.bf16.msra.mxu0 %v3568_v41 }
 0x6df   : > { %3253 = vmatprep.subr.bf16.mxu0 %v4184_v9 }
 0x6e2   : > { %3254 = vmatpush3.bf16.msra.mxu0 %v3569_v42 }
 0x6e3   : > { %3267 = vmatprep.subr.bf16.mxu0 %v4184_v9 }
 0x708   : > { %v1432_v61 = vpop.f32.mrb[8].mxu0 }
 0x709   : > { %v3205_v62 = vpop.f32.mrb[9].mxu0 }
 0x70a   : > { %v1435_v63 = vpop.f32.mrb[10].mxu0  ;;  %v3068_v62 = vld [vmem:[#allocation23] ss:$0 sm:$0xff] }
 0x70b   : > { %v3206_v1 = vpop.f32.mrb[11].mxu0 }
 0x77c   : > { %v1545_v3 = vpop.f32.mrb[12].mxu0 }
 0x77d   : > { %1772 = vrot.lane.b32.xlu0 %v1545_v3, %s5208_s25  ;;  %v3217_v4 = vpop.f32.mrb[13].mxu0  ;;  %s5281_s25 = smov 112  }
 0x77e   : > { %v1548_v5 = vpop.f32.mrb[14].mxu0 }
 0x77f   : > { %v3218_v6 = vpop.f32.mrb[15].mxu0 }
 0x784   : > { %v1655_v7 = vpop.f32.mrb[16].mxu0 }
 0x785   : > { %1776 = vrot.lane.b32.xlu1 %v1655_v7, %s5207_s12  ;;  %v3229_v8 = vpop.f32.mrb[17].mxu0  ;;  %s3039_s12 = sshll.u32 %s5302_s11, 3 }
 0x786   : > { %v1658_v10 = vpop.f32.mrb[18].mxu0  ;;  %s1093_s0 = scalar_lea.vmem %s5279_s3, %s3039_s12  ;;  %s5280_s3 = sld [smem:[#allocation54_spill]]  ;;  %v3570_v8 = vld [vmem:[#allocation25] sm:$0xff]  }
 0x787   : > { %v3230_v11 = vpop.f32.mrb[19].mxu0  ;;  %v1097_v38 = vld [vmem:[%s1093_s0] sm:$0xff]  ;;  %v1098_v39 = vld [vmem:[%s1093_s0 + $0x8] sm:$0xff]  ;;  %s5282_s12 = smov 104   ;;  %v3571_v10 = vld [vmem:[#allocation25 + $0x8] sm:$0xff]   ;;  %s5286_s0 = smov 8  }
 0x788   : > { %v1902_v40 = vpack.c.bf16 %v1098_v39, %v1097_v38 }
 0x78c   : > { %v3072_v53 = vld [vmem:[%s5280_s3] ss:$0 sm:$0xff]  ;;  %s5287_s3 = smov 16  }
 0x7b0   : > { %v1765_v13 = vpop.f32.mrb[20].mxu0 }
 0x7b1   : > { %1780 = vrot.lane.b32.xlu0 %v1765_v13, %s5206_s17  ;;  %v3241_v14 = vpop.f32.mrb[21].mxu0  ;;  %s5284_s17 = sld [smem:[#allocation55_spill]] }
 0x7b2   : > { %v1768_v15 = vpop.f32.mrb[22].mxu0 }
 0x7b3   : > { %v3242_v16 = vpop.f32.mrb[23].mxu0 }
 0x7ef   : > { %v1773_v17 = vpop.permute.xlu0 %1772 }
 0x7f0   : > { %v1783_v19 = vsel %vm1332_vm2, %v1432_v61, %v1773_v17 }
 0x7f7   : > { %v1777_v18 = vpop.permute.xlu1 %1776 }
 0x7f8   : > { %v1785_v20 = vsel %vm1784_vm4, %v1783_v19, %v1777_v18  ;;  %v3080_v18 = vld [vmem:[%s5283_s19] ss:$0 sm:$0xff]  ;;  %s5288_s19 = smov 24  }
 0x823   : > { %v1781_v21 = vpop.permute.xlu0 %1780 }
 0x824   : > { %v1787_v22 = vsel %vm1786_vm5, %v1785_v20, %v1781_v21 }
 0x825   : > { %v1788_v23 = vpack.c.bf16 %v1787_v22, %v1787_v22 }
 0x827   : > { %3248 = vmatmul.mubr.msk.bf16.vlgmr.msra.gmra.mrb[20].mxu1 %vm1101_vm0, %v1788_v23 }
 0x828   : > { %3263 = vmatprep.mubr.msk.bf16.mxu1 %vm4185_vm1, %v4184_v9  ;;  %3260 = vmatpush3.bf16.msra.mxu1 %v3566_v37 }
 0x829   : > { %3261 = vmatprep.subr.bf16.mxu1 %v4184_v9 }
 0x8fa   : > { %v1844_v25 = vpop.f32.mrb[20].mxu1 }
 0x8fb   : > { %v1845_v26 = vadd.f32 %v3062_v24, %v1844_v25  ;;  %v3249_v27 = vpop.f32.mrb[21].mxu1 }
 0x8fc   : > { %v1847_v28 = vpop.f32.mrb[22].mxu1 }
 0x8fd   : > { %v4957_v29 = vadd.f32 %v1845_v26, %v4849_v0  ;;  %v3250_v30 = vpop.f32.mrb[23].mxu1  ;;  %v3567_v0 = vld [vmem:[%s5167_s18 + $0x8] sm:$0xff]  }
 0x8fe   : > { %3262 = vmatpush3.bf16.msra.mxu1 %v3567_v0 }
 0x8ff   : > { %v1853_v31 = vsel %vm1101_vm0, %v4957_v29, 0.0  ;;  %3275 = vmatprep.subr.bf16.mxu1 %v4184_v9 }
 0x900   : > { %1854 = vadd.xlane.f32.xlu1 %v1853_v31 }
 0x901   : > { %3264 = vmatmul.mubr.msk.bf16.vlgmr.msra.gmra.mrb[24].mxu1 %vm1101_vm0, %v1902_v40 }
 0x902   : > { %3277 = vmatprep.mubr.msk.bf16.mxu1 %vm4185_vm1, %v4184_v9 }
 0x98d   : > { %v1855_v32 = vpop.xlane.xlu1 %1854 }
 0x98e   : > { %v1856_v33 = vmul.f32 0.03125, %v1855_v32 }
 0x990   : > { %v1857_v34 = vsub.f32 %v4957_v29, %v1856_v33 }
 0x992   : > { %v1858_v35 = vmul.f32 %v1857_v34, %v1857_v34 }
 0x994   : > { %v1859_v36 = vsel %vm1101_vm0, %v1858_v35, 0.0 }
 0x995   : > { %1860 = vadd.xlane.f32.xlu0 %v1859_v36 }
 0x9d4   : > { %v2019_v54 = vpop.f32.mrb[24].mxu1 }
 0x9d5   : > { %v2020_v55 = vadd.f32 %v3072_v53, %v2019_v54  ;;  %v3265_v56 = vpop.f32.mrb[25].mxu1 }
 0x9d6   : > { %v2022_v57 = vpop.f32.mrb[26].mxu1 }
 0x9d7   : > { %v2023_v58 = vadd.f32 %v3072_v53, %v2022_v57  ;;  %v3266_v59 = vpop.f32.mrb[27].mxu1 }
 0x9d9   : > { %v2092_v60 = vpack.c.bf16 %v2023_v58, %v2020_v55 }
 0x9db   : > { %2199 = vrot.lane.b32.xlu0 %v2092_v60, %s4187_s26  ;;  %v2098_v61 = vsel %vm1332_vm2, %v2092_v60, 0 }
 0x9dc   : > { %3276 = vmatpush3.bf16.xpose.msra.mxu1 %v2098_v61 }
 0x9dd   : > { %3287 = vmatprep.subr.bf16.mxu1 %v4184_v9 }
 0xa22   : > { %v1861_v43 = vpop.xlane.xlu0 %1860 }
 0xa23   : > { %v1862_v45 = vmul.f32 0.03125, %v1861_v43 }
 0xa25   : > { %v1863_v46 = vadd.f32 1e-05, %v1862_v45 }
 0xa27   : > { %3598 = vrsqrt.f32 %v1863_v46 }
 0xa31   : > { %v3599_v47 = vpop.eup %3598 }
 0xa32   : > { %v1865_v49 = vmul.f32 %v3599_v47, %v1857_v34  ;;  %v3076_v47 = vld [vmem:[%s5284_s17] ss:$0 sm:$0xff]  ;;  %s5289_s17 = sld [smem:[#allocation59_spill]] }
 0xa34   : > { %v1872_v51 = vmul.f32 %v3066_v48, %v1865_v49 }
 0xa36   : > { %v1879_v52 = vadd.f32 %v3067_v50, %v1872_v51 }
 0xa38   : > { %v1901_v44 = vpack.c.bf16 %v1879_v52, %v1879_v52 }
 0xa3a   : > { %3256 = vmatmul.mubr.msk.bf16.vlgmr.msra.gmra.mrb[24].mxu0 %vm1101_vm0, %v1901_v44 }
 0xa3b   : > { %3271 = vmatprep.mubr.msk.bf16.mxu0 %vm4185_vm1, %v4184_v9  ;;  %3268 = vmatpush3.bf16.msra.mxu0 %v3570_v8 }
 0xa3c   : > { %3269 = vmatprep.subr.bf16.mxu0 %v4184_v9 }
 0xa3f   : > { %3270 = vmatpush3.bf16.msra.mxu0 %v3571_v10 }
 0xa40   : > { %3281 = vmatprep.subr.bf16.mxu0 %v4184_v9 }
 0xa42   : > { %3272 = vmatmul.mubr.msk.bf16.vlgmr.msra.gmra.mrb[28].mxu0 %vm1101_vm0, %v1902_v40 }
 0xa43   : > { %3283 = vmatprep.mubr.msk.bf16.mxu0 %vm4185_vm1, %v4184_v9 }
 0xa4d   : > { %v2200_v3 = vpop.permute.xlu0 %2199 }
 0xa4e   : > { %v2205_v7 = vsel %vm1332_vm2, %v2200_v3, 0 }
 0xb0d   : > { %v1958_v63 = vpop.f32.mrb[24].mxu0 }
 0xb0e   : > { %v1959_v1 = vadd.f32 %v3068_v62, %v1958_v63  ;;  %v3257_v2 = vpop.f32.mrb[25].mxu0 }
 0xb0f   : > { %v1961_v4 = vpop.f32.mrb[26].mxu0 }
 0xb10   : > { %v2091_v5 = vpack.c.bf16 %v1959_v1, %v1959_v1  ;;  %v3258_v6 = vpop.f32.mrb[27].mxu0 }
 0xb12   : > { %2306 = vrot.lane.b32.xlu0 %v2091_v5, %s5281_s25  ;;  %2196 = vrot.lane.b32.xlu1 %v2091_v5, %s4187_s26 }
 0xb13   : > { %3278 = vmatmul.mubr.msk.bf16.vlgmr.msra.gmra.mrb[28].mxu1 %vm1332_vm2, %v2091_v5 }
 0xb14   : > { %3288 = vmatpush3.bf16.xpose.msra.mxu1 %v2205_v7  ;;  %3289 = vmatprep.mubr.msk.bf16.mxu1 %vm4185_vm1, %v4184_v9 }
 0xb15   : > { %3299 = vmatprep.subr.bf16.mxu1 %v4184_v9  ;;  %v2078_v48 = vpop.f32.mrb[28].mxu0 }
 0xb16   : > { %2414 = vrot.lane.b32.xlu0 %v2091_v5, %s5282_s12  ;;  %2308 = vrot.lane.b32.xlu1 %v2092_v60, %s5281_s25  ;;  %v2079_v49 = vadd.f32 %v3076_v47, %v2078_v48  ;;  %v3273_v50 = vpop.f32.mrb[29].mxu0 }
 0xb17   : > { %v2081_v51 = vpop.f32.mrb[30].mxu0 }
 0xb18   : > { %v2082_v52 = vadd.f32 %v3076_v47, %v2081_v51  ;;  %v3274_v44 = vpop.f32.mrb[31].mxu0 }
 0xb1a   : > { %2416 = vrot.lane.b32.xlu1 %v2092_v60, %s5282_s12  ;;  %v2093_v55 = vpack.c.bf16 %v2082_v52, %v2079_v49 }
 0xb1c   : > { %3282 = vmatpush3.bf16.msra.mxu0 %v2093_v55 }
 0xb1d   : > { %3293 = vmatprep.subr.bf16.mxu0 %v4184_v9 }
 0xb84   : > { %v2197_v11 = vpop.permute.xlu1 %2196  ;;  %v2307_v15 = vpop.permute.xlu0 %2306 }
 0xb85   : > { %3290 = vmatmul.mubr.msk.bf16.vlgmr.msra.gmra.mrb[32].mxu1 %vm1332_vm2, %v2197_v11 }
 0xb86   : > { %3301 = vmatprep.mubr.msk.bf16.mxu1 %vm4185_vm1, %v4184_v9 }
 0xb88   : > { %v2309_v12 = vpop.permute.xlu1 %2308  ;;  %v2415_v17 = vpop.permute.xlu0 %2414 }
 0xb89   : > { %v2314_v13 = vsel %vm1332_vm2, %v2309_v12, 0 }
 0xb8a   : > { %3300 = vmatpush3.bf16.xpose.msra.mxu1 %v2314_v13 }
 0xb8b   : > { %3311 = vmatprep.subr.bf16.mxu1 %v4184_v9 }
 0xb8c   : > { %v2417_v14 = vpop.permute.xlu1 %2416 }
 0xb8d   : > { %v2422_v16 = vsel %vm1332_vm2, %v2417_v14, 0 }
 0xb91   : > { %3302 = vmatmul.mubr.msk.bf16.vlgmr.msra.gmra.mrb[36].mxu1 %vm1332_vm2, %v2307_v15 }
 0xb92   : > { %3312 = vmatpush3.bf16.xpose.msra.mxu1 %v2422_v16  ;;  %3313 = vmatprep.mubr.msk.bf16.mxu1 %vm4185_vm1, %v4184_v9 }
 0xb93   : > { %3323 = vmatprep.subr.bf16.mxu1 %v4184_v9 }
 0xb99   : > { %3314 = vmatmul.mubr.msk.bf16.vlgmr.msra.gmra.mrb[40].mxu1 %vm1332_vm2, %v2415_v17 }
 0xb9a   : > { %3327 = vmatprep.mubr.msk.bf16.mxu1 %vm4185_vm1, %v4184_v9 }
 0xbe6   : > { %v2134_v19 = vpop.f32.mrb[28].mxu1 }
 0xbe7   : > { %v2135_v20 = vadd.f32 %v3080_v18, %v2134_v19  ;;  %v3279_v21 = vpop.f32.mrb[29].mxu1 }
 0xbe8   : > { %v2137_v22 = vpop.f32.mrb[30].mxu1 }
 0xbe9   : > { %v3280_v23 = vpop.f32.mrb[31].mxu1  ;;  %v2140_v24 = vsel %vm1784_vm4, %v2135_v20, -inf }
 0xbea   : > { %2141 = vmax.xlane.f32.xlu1 %v2140_v24 }
 0xc58   : > { %v2241_v25 = vpop.f32.mrb[32].mxu1 }
 0xc59   : > { %v2242_v26 = vadd.f32 %v3080_v18, %v2241_v25  ;;  %v3291_v27 = vpop.f32.mrb[33].mxu1 }
 0xc5a   : > { %v2244_v28 = vpop.f32.mrb[34].mxu1 }
 0xc5b   : > { %v3292_v30 = vpop.f32.mrb[35].mxu1  ;;  %v2247_v31 = vsel %vm1784_vm4, %v2242_v26, -inf }
 0xc5c   : > { %2248 = vmax.xlane.f32.xlu0 %v2247_v31 }
 0xc64   : > { %v2350_v32 = vpop.f32.mrb[36].mxu1 }
 0xc65   : > { %v2351_v33 = vadd.f32 %v3080_v18, %v2350_v32  ;;  %v3303_v34 = vpop.f32.mrb[37].mxu1 }
 0xc66   : > { %v2353_v35 = vpop.f32.mrb[38].mxu1 }
 0xc67   : > { %v3304_v36 = vpop.f32.mrb[39].mxu1  ;;  %v2356_v37 = vsel %vm1784_vm4, %v2351_v33, -inf }
 0xc68   : > { %2357 = vmax.xlane.f32.xlu0 %v2356_v37 }
 0xc6c   : > { %v2458_v0 = vpop.f32.mrb[40].mxu1 }
 0xc6d   : > { %v2459_v38 = vadd.f32 %v3080_v18, %v2458_v0  ;;  %v3315_v39 = vpop.f32.mrb[41].mxu1 }
 0xc6e   : > { %v2461_v40 = vpop.f32.mrb[42].mxu1 }
 0xc6f   : > { %v3316_v41 = vpop.f32.mrb[43].mxu1  ;;  %v2464_v42 = vsel %vm1784_vm4, %v2459_v38, -inf }
 0xc70   : > { %2465 = vmax.xlane.f32.xlu1 %v2464_v42  ;;  %v3573_v41 = vld [vmem:[%s5285_s6 + $0x8] sm:$0xff]  }
 0xc77   : > { %v2142_v43 = vpop.xlane.xlu1 %2141 }
 0xc78   : > { %v2143_v45 = vsub.f32 %v2135_v20, %v2142_v43 }
 0xc7a   : > { %v2144_v46 = vmul.f32 1.442695, %v2143_v45 }
 0xc7c   : > { %3600 = vpow2.f32 %v2144_v46 }
 0xc86   : > { %v3601_v53 = vpop.eup %3600 }
 0xc87   : > { %v2146_v54 = vsel %vm1784_vm4, %v3601_v53, 0.0 }
 0xc88   : > { %2147 = vadd.xlane.f32.xlu0 %v2146_v54  ;;  %v3575_v54 = vld [vmem:[#allocation26 + $0x8] sm:$0xff]  }
 0xce9   : > { %v2249_v56 = vpop.xlane.xlu0 %2248 }
 0xcea   : > { %v2250_v57 = vsub.f32 %v2242_v26, %v2249_v56  ;;  %v3577_v56 = vld [vmem:[%s5289_s17 + $0x8] sm:$0xff]  }
 0xcec   : > { %v2251_v58 = vmul.f32 1.442695, %v2250_v57 }
 0xcee   : > { %3602 = vpow2.f32 %v2251_v58 }
 0xcf5   : > { %v2358_v59 = vpop.xlane.xlu0 %2357 }
 0xcf6   : > { %v2359_v60 = vsub.f32 %v2351_v33, %v2358_v59  ;;  %v3572_v33 = vld [vmem:[%s5285_s6] sm:$0xff]   ;;  %s5293_s6 = sld [smem:[#allocation61_spill]] }
 0xcf7   : > { %3324 = vmatpush3.bf16.msra.mxu1 %v3572_v33 }
 0xcf8   : > { %v3603_v61 = vpop.eup %3602  ;;  %v2360_v62 = vmul.f32 1.442695, %v2359_v60  ;;  %3325 = vmatprep.subr.bf16.mxu1 %v4184_v9 }
 0xcf9   : > { %v2253_v63 = vsel %vm1784_vm4, %v3603_v61, 0.0 }
 0xcfa   : > { %3604 = vpow2.f32 %v2360_v62  ;;  %2254 = vadd.xlane.f32.xlu1 %v2253_v63 }
 0xcfb   : > { %3326 = vmatpush3.bf16.msra.mxu1 %v3573_v41 }
 0xcfc   : > { %3339 = vmatprep.subr.bf16.mxu1 %v4184_v9  ;;  %s5104_s7 = scalar_lea.hbm %s5293_s6, %s3104_s23 }
 0xcfd   : > { %v2466_v4 = vpop.xlane.xlu1 %2465 }
 0xcfe   : > { %v2467_v5 = vsub.f32 %v2459_v38, %v2466_v4 }
 0xd00   : > { %v2468_v6 = vmul.f32 1.442695, %v2467_v5 }
 0xd04   : > { %v3605_v1 = vpop.eup %3604 }
 0xd05   : > { %v2362_v2 = vsel %vm1784_vm4, %v3605_v1, 0.0 }
 0xd06   : > { %2363 = vadd.xlane.f32.xlu0 %v2362_v2  ;;  %v3578_v2 = vld [vmem:[%s5289_s17 + $0x10] sm:$0xff]  }
 0xd0b   : > { %2368 = vrot.lane.b32.xlu1 %v2093_v55, %s5281_s25  ;;  %s5290_s25 = sld [smem:[#allocation57_spill]] }
 0xd11   : > { %v3089_v57 = vld [vmem:[%s5290_s25] ss:$0 sm:$0xff]  ;;  %s4192_s25 = smov [#allocation28]  }
 0xd15   : > { %v2148_v3 = vpop.xlane.xlu0 %2147 }
 0xd16   : > { %3606 = vrcp.f32 %v2148_v3  ;;  %v3579_v3 = vld [vmem:[%s5289_s17 + $0x18] sm:$0xff]  }
 0xd17   : > { %3608 = vpow2.f32 %v2468_v6 }
 0xd1c   : > { %2260 = vrot.lane.b32.xlu0 %v2093_v55, %s4187_s26 }
 0xd20   : > { %v3607_v7 = vpop.eup %3606 }
 0xd21   : > { %v2150_v8 = vmul.f32 %v3607_v7, %v3601_v53  ;;  %v3609_v11 = vpop.eup %3608  ;;  %v3574_v53 = vld [vmem:[#allocation26] sm:$0xff]  }
 0xd22   : > { %v2470_v12 = vsel %vm1784_vm4, %v3609_v11, 0.0 }
 0xd23   : > { %v2151_v10 = vpack.c.bf16 %v2150_v8, %v2150_v8 }
 0xd25   : > { %3284 = vmatmul.mubr.msk.bf16.vlgmr.msra.gmra.mrb[32].mxu0 %vm1784_vm4, %v2151_v10 }
 0xd26   : > { %3295 = vmatprep.mubr.msk.bf16.mxu0 %vm4185_vm1, %v4184_v9 }
 0xd2f   : > { %2471 = vadd.xlane.f32.xlu1 %v2470_v12 }
 0xd40   : > { %2476 = vrot.lane.b32.xlu1 %v2093_v55, %s5282_s12  ;;  %v3576_v55 = vld [vmem:[%s5289_s17] sm:$0xff]   ;;  %s4070_s12 = sshll.u32 %s4192_s25, 4  ;;  %s4071_s12 = int_to_ptr.vmem [resolvable:$false] %s4070_s12 }
 0xd87   : > { %v2255_v13 = vpop.xlane.xlu1 %2254 }
 0xd88   : > { %3610 = vrcp.f32 %v2255_v13 }
 0xd8b   : > { %v2369_v19 = vpop.permute.xlu1 %2368 }
 0xd92   : > { %v3611_v14 = vpop.eup %3610 }
 0xd93   : > { %v2364_v15 = vpop.xlane.xlu0 %2363  ;;  %v2257_v16 = vmul.f32 %v3611_v14, %v3603_v61 }
 0xd94   : > { %3612 = vrcp.f32 %v2364_v15 }
 0xd95   : > { %v2258_v18 = vpack.c.bf16 %v2257_v16, %v2257_v16 }
 0xd97   : > { %v2261_v17 = vpop.permute.xlu0 %2260 }
 0xd98   : > { %3294 = vmatpush3.bf16.msra.mxu0 %v2261_v17 }
 0xd99   : > { %3305 = vmatprep.subr.bf16.mxu0 %v4184_v9 }
 0xd9b   : > { %3296 = vmatmul.mubr.msk.bf16.vlgmr.msra.gmra.mrb[36].mxu0 %vm1784_vm4, %v2258_v18 }
 0xd9c   : > { %3306 = vmatpush3.bf16.msra.mxu0 %v2369_v19  ;;  %3307 = vmatprep.mubr.msk.bf16.mxu0 %vm4185_vm1, %v4184_v9 }
 0xd9d   : > { %3317 = vmatprep.subr.bf16.mxu0 %v4184_v9 }
 0xd9e   : > { %v3613_v20 = vpop.eup %3612 }
 0xd9f   : > { %v2366_v21 = vmul.f32 %v3613_v20, %v3605_v1 }
 0xda1   : > { %v2367_v22 = vpack.c.bf16 %v2366_v21, %v2366_v21 }
 0xda3   : > { %3308 = vmatmul.mubr.msk.bf16.vlgmr.msra.gmra.mrb[40].mxu0 %vm1784_vm4, %v2367_v22 }
 0xda4   : > { %3319 = vmatprep.mubr.msk.bf16.mxu0 %vm4185_vm1, %v4184_v9 }
 0xdbc   : > { %v2472_v23 = vpop.xlane.xlu1 %2471 }
 0xdbd   : > { %3614 = vrcp.f32 %v2472_v23 }
 0xdc0   : > { %v2477_v24 = vpop.permute.xlu1 %2476 }
 0xdc1   : > { %3318 = vmatpush3.bf16.msra.mxu0 %v2477_v24 }
 0xdc2   : > { %3331 = vmatprep.subr.bf16.mxu0 %v4184_v9 }
 0xdc7   : > { %v3615_v25 = vpop.eup %3614 }
 0xdc8   : > { %v2474_v26 = vmul.f32 %v3615_v25, %v3609_v11 }
 0xdca   : > { %v2475_v27 = vpack.c.bf16 %v2474_v26, %v2474_v26 }
 0xdcc   : > { %3320 = vmatmul.mubr.msk.bf16.vlgmr.msra.gmra.mrb[44].mxu0 %vm1784_vm4, %v2475_v27 }
 0xdcd   : > { %3335 = vmatprep.mubr.msk.bf16.mxu0 %vm4185_vm1, %v4184_v9  ;;  %3332 = vmatpush3.bf16.msra.mxu0 %v3574_v53 }
 0xdce   : > { %3333 = vmatprep.subr.bf16.mxu0 %v4184_v9 }
 0xdd1   : > { %3334 = vmatpush3.bf16.msra.mxu0 %v3575_v54 }
 0xdf8   : > { %v2189_v28 = vpop.f32.mrb[32].mxu0 }
 0xdf9   : > { %v3285_v30 = vpop.f32.mrb[33].mxu0 }
 0xdfa   : > { %v2192_v31 = vpop.f32.mrb[34].mxu0 }
 0xdfb   : > { %v3286_v32 = vpop.f32.mrb[35].mxu0 }
 0xe6e   : > { %v2300_v34 = vpop.f32.mrb[36].mxu0 }
 0xe6f   : > { %2523 = vrot.lane.b32.xlu0 %v2300_v34, %s5286_s0  ;;  %v3297_v35 = vpop.f32.mrb[37].mxu0  ;;  %s5291_s0 = sld [smem:[#allocation58_spill]] }
 0xe70   : > { %v2303_v36 = vpop.f32.mrb[38].mxu0 }
 0xe71   : > { %v3298_v37 = vpop.f32.mrb[39].mxu0 }
 0xe76   : > { %v2408_v0 = vpop.f32.mrb[40].mxu0 }
 0xe77   : > { %2527 = vrot.lane.b32.xlu1 %v2408_v0, %s5287_s3  ;;  %v3309_v38 = vpop.f32.mrb[41].mxu0  ;;  %s3036_s3 = sshll.u32 %s4804_s22, 3 }
 0xe78   : > { %v2411_v39 = vpop.f32.mrb[42].mxu0  ;;  %s1084_s4 = scalar_lea.vmem [#allocation28], %s3036_s3 }
 0xe79   : > { %v3310_v40 = vpop.f32.mrb[43].mxu0  ;;  %s2767_s26 = sshll.u32 %s1084_s4, 4  ;;  %s5106_s26 = int_to_ptr.vmem [resolvable:$true] %s2767_s26 }
 0xe7a   : > { %s4066_s3 = scalar_lea.vmem %s5106_s26, 128  ;;  %p4073_p12 = scmp.lt.s32.totalorder %s5106_s26, %s4071_s12 }
 0xe7b   : > { %p4067_p5 = scmp.ne.s32.totalorder %s5106_s26, %s4066_s3 }
 0xe7d   : > { %p4068_p7 = pnand %p4067_p5, %p5294_p9 }
 0xe7f   : > { %p4069_p10 = pneg %p4068_p7 }
 0xe9f   : > { %v2516_v42 = vpop.f32.mrb[44].mxu0 }
 0xea0   : > { %2531 = vrot.lane.b32.xlu0 %v2516_v42, %s5288_s19  ;;  %v3321_v43 = vpop.f32.mrb[45].mxu0  ;;  %s5292_s19 = sld [smem:[#allocation60_spill]] }
 0xea1   : > { %v2519_v45 = vpop.f32.mrb[46].mxu0 }
 0xea2   : > { %v3322_v46 = vpop.f32.mrb[47].mxu0 }
 0xee1   : > { %v2524_v47 = vpop.permute.xlu0 %2523 }
 0xee2   : > { %v2534_v49 = vsel %vm1332_vm2, %v2189_v28, %v2524_v47 }
 0xee9   : > { %v2528_v48 = vpop.permute.xlu1 %2527 }
 0xeea   : > { %v2535_v50 = vsel %vm1784_vm4, %v2534_v49, %v2528_v48 }
 0xf12   : > { %v2532_v51 = vpop.permute.xlu0 %2531 }
 0xf13   : > { %v2536_v52 = vsel %vm1786_vm5, %v2535_v50, %v2532_v51 }
 0xf14   : > { %v2537_v44 = vpack.c.bf16 %v2536_v52, %v2536_v52 }
 0xf16   : > { %3328 = vmatmul.mubr.msk.bf16.vlgmr.msra.gmra.mrb[44].mxu1 %vm1101_vm0, %v2537_v44 }
 0xf17   : > { %3347 = vmatprep.mubr.msk.bf16.mxu1 %vm4185_vm1, %v4184_v9  ;;  %3340 = vmatpush3.bf16.msra.mxu1 %v3576_v55 }
 0xf18   : > { %3341 = vmatprep.subr.bf16.mxu1 %v4184_v9 }
 0xf1b   : > { %3342 = vmatpush3.bf16.msra.mxu1 %v3577_v56 }
 0xf1c   : > { %3343 = vmatprep.subr.bf16.mxu1 %v4184_v9 }
 0xf1f   : > { %3344 = vmatpush3.bf16.msra.mxu1 %v3578_v2 }
 0xf20   : > { %3345 = vmatprep.subr.bf16.mxu1 %v4184_v9  ;;  %v3097_v9 = vld [vmem:[%s5292_s19] ss:$0 sm:$0xff]  ;;  %s4072_s19 = scalar_lea.vmem %s4071_s12, 256 }
 0xf21   : > { %p4074_p1 = scmp.lt.s32.totalorder %s4072_s19, %s4066_s3 }
 0xf23   : > { %3346 = vmatpush3.bf16.msra.mxu1 %v3579_v3  ;;  %p4075_p13 = por %p4074_p1, %p4073_p12 }
 0xf25   : > { %p4076_p0 = pnand %p4075_p13, %p4069_p10 }
 0xfe9   : > { %v2593_v58 = vpop.f32.mrb[44].mxu1 }
 0xfea   : > { %v2594_v59 = vadd.f32 %v3089_v57, %v2593_v58  ;;  %v3329_v60 = vpop.f32.mrb[45].mxu1 }
 0xfeb   : > { %v2596_v61 = vpop.f32.mrb[46].mxu1 }
 0xfec   : > { %v2599_v62 = vadd.f32 %v2594_v59, %v4957_v29  ;;  %v3330_v63 = vpop.f32.mrb[47].mxu1  ;;  %v3093_v29 = vld [vmem:[%s5291_s0] ss:$0 sm:$0xff] }
 0xfee   : > { %v2600_v1 = vpack.c.bf16 %v2599_v62, %v2599_v62 }
 0xff0   : > { %3336 = vmatmul.mubr.msk.bf16.vlgmr.msra.gmra.mrb[48].mxu0 %vm1101_vm0, %v2600_v1 }
0x10c3   : > { %v2661_v4 = vpop.f32.mrb[48].mxu0 }
0x10c4   : > { %v2662_v5 = vadd.f32 %v3093_v29, %v2661_v4  ;;  %v3337_v6 = vpop.f32.mrb[49].mxu0 }
0x10c5   : > { %v2664_v7 = vpop.f32.mrb[50].mxu0 }
0x10c6   : > { %v2667_v8 = vmax.f32 %v2662_v5, 0.0  ;;  %v3338_v10 = vpop.f32.mrb[51].mxu0 }
0x10c8   : > { %v2668_v11 = vpack.c.bf16 %v2667_v8, %v2667_v8 }
0x10ca   : > { %3348 = vmatmul.mubr.msk.bf16.vlgmr.msra.gmra.mrb[48].mxu1 %vm2708_vm6, %v2668_v11 }
0x119d   : > { %v2746_v12 = vpop.f32.mrb[48].mxu1 }
0x119e   : > { %v2747_v13 = vadd.f32 %v3097_v9, %v2746_v12  ;;  %v3349_v14 = vpop.f32.mrb[49].mxu1 }
0x119f   : > { %v2749_v15 = vpop.f32.mrb[50].mxu1 }
0x11a0   : > { %v3350_v16 = vpop.f32.mrb[51].mxu1  ;;  %2752 = vst.msk [vmem:[%s1084_s4] sm:$0xff] %vm1101_vm0, %v2747_v13 }
0x11a1   : > { %4079 = shalt.err (!%p4076_p0)
}
0x11a2   : > { %s4080_s22 = scalar_lea.hbm %s5104_s7, 128  ;;  %s4084_s11 = scalar_lea.hbm %s5293_s6, 256 }
0x11a3   : > { %p4081_p2 = scmp.ne.s32.totalorder %s5104_s7, %s4080_s22  ;;  %p4085_p4 = scmp.lt.u32.totalorder %s5104_s7, %s5293_s6 }
0x11a4   : > { %p4086_p11 = scmp.lt.u32.totalorder %s4084_s11, %s4080_s22  ;;  %p4088_p5 = scmp.lt.u32.totalorder %s4080_s22, %s5104_s7 }
0x11a5   : > { %p4082_p3 = pnand %p4081_p2, %p5294_p9 }
0x11a6   : > { %p4087_p8 = por %p4086_p11, %p4085_p4 }
0x11a7   : > { %p4083_p6 = pneg %p4082_p3 }
0x11a8   : > { %p4089_p7 = por %p4088_p5, %p4087_p8 }
0x11aa   : > { %p4090_p10 = pnand %p4089_p7, %p4083_p6 }
0x11ac   : > { %4093 = shalt.err (!%p4090_p10)
}
0x11ad   : > { %3413 = dma.vmem_to_hbm [thread:$0]  (%p5294_p9), %s5106_s26, 128, %s5104_s7, %s2754_s10  }
0x11ae PF: > { %s2779_s3 = sand.u32 1, %s4152_s8   ;;  %p5295_p12 = scmp.ne.s32.totalorder %s5257_s21, 0 }
0x11af   : > { %p5296_p1 = scmp.ge.s32.totalorder %s4164_s30, 2  ;;  %s2780_s12 = scalar_lea.sflag [#allocation4], %s2779_s3 }
0x11b1   : > { %p3466_p13 = pnand %p5296_p1, %p5295_p12 }
0x11b3   : > { %4147 = dma.done.wait (!%p3466_p13), %s2780_s12, 128  }
0x11b4   : > { %4149 = vsyncadd (!%p3466_p13), %s2780_s12, 4294967168  ;;  %p49_p0 = scmp.ge.s32.totalorder %s4734_s2, 4   ;;  %s5297_s8 = smov %s4156_s5 }
0x11b5   : > { %s5298_s5 = smov %s4160_s9  ;;  %s5299_s9 = smov %s4746_s1 }
0x11b6   : > { %s5300_s30 = smov %s4734_s2  ;;  %51 = sbr.rel (!%p49_p0) target bundleno = 37 (0x25), region = 243 }
0x11bd   :  { %2785 = vsyncpa [#allocation3], 1 }
0x11be   :  { %2787 = vsyncpa [#allocation3 + $0x1], 1 }
0x11bf   :  { %2788 = vsyncpa [#allocation6], 1 }
0x11c0   :  { %2789 = vsyncpa [#allocation9], 1 }
0x11c1   :  { %2790 = vsyncpa [#allocation12], 1 }
0x11c2   :  { %2791 = vsyncpa [#allocation15], 1 }
0x11c3   :  { %2792 = vsyncpa [#allocation18], 1 }
0x11c4   :  { %2793 = vsyncpa [#allocation21], 1 }
0x11c5   :  { %2794 = vsyncpa [#allocation24], 1 }
0x11c6   :  { %2795 = vsyncpa [#allocation27], 1 }
0x11c7   :  { %2796 = vsyncpa [#allocation4], 1 }
0x11c8   :  { %2798 = vsyncpa [#allocation4 + $0x1], 1 }

</bundles_post_ra>
